<compile_context>
chip_gen: v7x
topology: tpu7x:2x2x1
jax: 0.10.0
libtpu: 0.0.40
codegen_flags: <defaults>
</compile_context>

<pallas_src>
import math
import numpy as np
import jax
import jax.numpy as jnp
from jax import lax
from jax.experimental import pallas as pl
from jax.experimental.pallas import tpu as pltpu

Q_DIM = 4
HIDDEN = 32
BATCH = 8
NUM_LO = (Q_DIM * Q_DIM - Q_DIM) // 2
# Reference quirk: self.neg_slope = -0.01 is used in the analytic gradient chain,
# while the forward leaky_relu uses slope +0.01.  Reproduced faithfully.
NEG_SLOPE = -0.01

_VMEM = pl.BlockSpec(memory_space=pltpu.MemorySpace.VMEM)


def _delan_kernel(xu_ref, w1_ref, wcomb_ref, bias_ref, out_ref):
    xu = xu_ref[...]                        # (n, 3d) = [q | q_dot | u]
    n = xu.shape[0]
    d = xu.shape[1] // 3
    nLo = (d * d - d) // 2
    h = w1_ref.shape[1]
    rows, cols = np.tril_indices(d, k=-1)   # torch masked-fill (row-major) order
    m_of = {(int(rows[m]), int(cols[m])): m for m in range(nLo)}

    q = xu[:, :d]
    qdot = xu[:, d:2 * d]
    u = xu[:, 2 * d:]

    # packed operands (packing done once in pack_params, outside the jit)
    w1 = w1_ref[...]                        # (2d, h)  = W1.T  rows 0..d-1: cos, d..2d-1: sin
    wcomb = wcomb_ref[...]                  # (h, h + 2d + nLo) = [W2.T | WG.T | WLd.T | WLo.T]
    w2 = wcomb[:, :h]
    wh = wcomb[:, h:]
    bias = bias_ref[...]                    # (1, 2h + 2d + nLo) = [b1 | b2 | bG | bLd | bLo]
    b1 = bias[:, :h]
    b2 = bias[:, h:2 * h]
    bh = bias[:, 2 * h:]

    # CosSin embedding assumed as [cos(q) | sin(q)] with analytic derivative
    # der[:, k] = (-sin(q_k) e_k , cos(q_k) e_k)  (CosSin body not in the spec).
    cq = jnp.cos(q)
    sq = jnp.sin(q)

    # ------------- MLP forward + gradient chain: 3 fused MXU matmuls -------------
    cs = jnp.concatenate([cq, sq], axis=1)                                    # CosSin(q)
    z1 = jnp.dot(cs, w1, preferred_element_type=jnp.float32) + b1
    h1 = jnp.where(z1 > 0, z1, 0.01 * z1)                                     # leaky_relu(+0.01)
    d1 = jnp.where(h1 > 0, 1.0, NEG_SLOPE)

    # per-q-dim derivative of fc1 pushed through dRelu, stacked UNDER h1 so the
    # shared-RHS (W2.T) matmul is a single launch.
    dh1_parts = []
    for k in range(d):
        dercol = (-sq[:, k:k + 1]) * w1[k:k + 1, :] + cq[:, k:k + 1] * w1[d + k:d + k + 1, :]
        dh1_parts.append(d1 * dercol)                                         # (n, h)
    big2 = jnp.dot(jnp.concatenate([h1] + dh1_parts, axis=0), w2,
                   preferred_element_type=jnp.float32)                        # ((d+1)n, h)

    z2 = big2[:n, :] + b2
    h2 = jnp.where(z2 > 0, z2, 0.01 * z2)
    d2 = jnp.where(h2 > 0, 1.0, NEG_SLOPE)

    # [h2 ; d2 * (dh1_k @ W2.T)] -> single matmul with the fused head weights.
    stack2 = jnp.concatenate(
        [h2] + [d2 * big2[(k + 1) * n:(k + 2) * n, :] for k in range(d)], axis=0)
    big3 = jnp.dot(stack2, wh, preferred_element_type=jnp.float32)            # ((d+1)n, 2d+nLo)

    heads = big3[:n, :] + bh
    g = heads[:, :d]                                                          # potentials
    h3 = heads[:, d:2 * d]                                                    # fc_Ld pre-act
    Lo = heads[:, 2 * d:]                                                     # strictly-lower of L

    # one shared exp for softplus(h3) (torch threshold=20) and sigmoid(h3)
    t = jnp.exp(jnp.minimum(h3, 20.0))
    Ld = jnp.where(h3 > 20.0, h3, jnp.log(1.0 + t))                           # softplus
    s3 = t / (1.0 + t)                                                        # sigmoid

    # big3 rows n..: row (k+1)*n + b holds [ (unused G cols) | dLd/dq_k (pre-sigmoid) | dLo/dq_k ]

    # ---- lower-triangular helpers: slice resident slabs at point of use ----
    def Lc(i, j):                       # L[i][j], i >= j
        if i == j:
            return Ld[:, i:i + 1]
        m = m_of[(i, j)]
        return Lo[:, m:m + 1]

    qd = [qdot[:, i:i + 1] for i in range(d)]

    # w = qdot^T L per sample (needed for dH/dt qdot and for the Coriolis gather)
    wcols = []
    for p in range(d):
        s = qd[p] * Lc(p, p)
        for i in range(p + 1, d):
            s = s + qd[i] * Lc(i, p)
        wcols.append(s)
    qw = jnp.concatenate([qdot] + wcols, axis=1)                              # (n, 2d)

    # reference repeat()/view() gather index g = (b*d + k) % n is periodic in b
    # with period per = n / gcd(d, n)  ->  'per' broadcast-row selects per k.
    per = n // math.gcd(d, n)
    row_mod = lax.broadcasted_iota(jnp.int32, (n, 1), 0) % per

    dLd_dt = jnp.zeros((n, d), jnp.float32)
    dLo_dt = jnp.zeros((n, nLo), jnp.float32)
    quad = []
    for k in range(d):
        blk = big3[(k + 1) * n:(k + 2) * n, :]
        dld_k = s3 * blk[:, d:2 * d]           # [b, i] = dLd_i/dq_k
        dlo_k = blk[:, 2 * d:]                 # [b, o] = dLo_o/dq_k
        dLd_dt = dLd_dt + dld_k * qd[k]
        dLo_dt = dLo_dt + dlo_k * qd[k]

        # gather [qdot | w] rows at index (b*d + k) % n with parity selects
        qwg = jnp.zeros((n, 2 * d), jnp.float32)
        for r in range(per):
            src = (r * d + k) % n
            qwg = jnp.where(row_mod == r, qw[src:src + 1, :], qwg)

        # scrambled dL/dq_k (reference diag_embed / masked-fill flatten quirk)
        def Mc(i, j):
            if i == j:
                return dld_k[:, i:i + 1]
            o, kk = divmod(k * nLo + m_of[(i, j)], d)
            return big3[(kk + 1) * n:(kk + 2) * n, 2 * d + o:2 * d + o + 1]

        # quad_k = qg^T (M L_g^T + L_g M^T) qg = 2 (qg^T M) . (qg^T L_g)
        s = None
        for j in range(d):
            tcol = qwg[:, j:j + 1] * Mc(j, j)
            for i in range(j + 1, d):
                tcol = tcol + qwg[:, i:i + 1] * Mc(i, j)
            tcol = tcol * qwg[:, d + j:d + j + 1]
            s = tcol if s is None else s + tcol
        quad.append(2.0 * s)

    def Dc(i, j):                       # dL/dt [i][j], i >= j
        if i == j:
            return dLd_dt[:, i:i + 1]
        m = m_of[(i, j)]
        return dLo_dt[:, m:m + 1]

    # a = qdot^T dL/dt
    acols = []
    for p in range(d):
        s = qd[p] * Dc(p, p)
        for i in range(p + 1, d):
            s = s + qd[i] * Dc(i, p)
        acols.append(s)

    # v = u - c - g,   c = (dH/dt) qdot - 0.5 quad = L a + (dL/dt) w - 0.5 quad
    # H = L L^T + 1e-9 I  (lower triangle only; H symmetric)
    v = []
    H = {}
    for i in range(d):
        dHq = Lc(i, 0) * acols[0] + Dc(i, 0) * wcols[0]
        for p in range(1, i + 1):
            dHq = dHq + Lc(i, p) * acols[p] + Dc(i, p) * wcols[p]
        v.append(u[:, i:i + 1] - (dHq - 0.5 * quad[i]) - g[:, i:i + 1])
        for j in range(i + 1):
            s = Lc(i, 0) * Lc(j, 0)
            for p in range(1, j + 1):
                s = s + Lc(i, p) * Lc(j, p)
            if i == j:
                s = s + 1e-9
            H[(i, j)] = s

    # closed-form SPD solve H x = v: unrolled Cholesky, rsqrt + cached reciprocals
    C = {}
    inv_d = [None] * d
    for i in range(d):
        s = H[(i, i)]
        for p in range(i):
            s = s - C[(i, p)] * C[(i, p)]
        inv = lax.rsqrt(s)
        inv_d[i] = inv
        C[(i, i)] = s * inv
        for r in range(i + 1, d):
            s2 = H[(r, i)]
            for p in range(i):
                s2 = s2 - C[(r, p)] * C[(i, p)]
            C[(r, i)] = s2 * inv
    y = []
    for i in range(d):
        s = v[i]
        for p in range(i):
            s = s - C[(i, p)] * y[p]
        y.append(s * inv_d[i])
    x = [None] * d
    for i in range(d - 1, -1, -1):
        s = y[i]
        for p in range(i + 1, d):
            s = s - C[(p, i)] * x[p]
        x[i] = s * inv_d[i]

    # only qddot_pred leaves the kernel; the rest of the output is assembled in JAX
    out_ref[...] = jnp.concatenate(x, axis=1)                                 # (n, d)


def pack_params(params):
    """One-time packing OUTSIDE the jitted forward: transpose weights, fuse the
    three output heads, and pack the small operands into 3 VMEM buffers."""
    (W1, b1), (W2, b2), (WG, bG), (WLd, bLd), (WLo, bLo) = params
    wcomb = jnp.concatenate([W2.T, WG.T, WLd.T, WLo.T], axis=1)   # (h, h + 2d + nLo)
    bias = jnp.concatenate([b1, b2, bG, bLd, bLo], axis=1)        # (1, 2h + 2d + nLo)
    return (W1.T, wcomb, bias)


@jax.jit
def delan_forward(packed, xu):
    n, three_d = xu.shape
    d = three_d // 3
    w1t, wcomb, bias = packed
    qddot = pl.pallas_call(
        _delan_kernel,
        out_shape=jax.ShapeDtypeStruct((n, d), jnp.float32),
        in_specs=[_VMEM] * 4,
        out_specs=_VMEM,
    )(xu, w1t, wcomb, bias)
    q_dot = xu[:, d:2 * d]
    # [q_dot | qddot_pred | zeros] assembled outside the kernel (layout plumbing only)
    return jnp.concatenate([q_dot, qddot, jnp.zeros((n, d), xu.dtype)], axis=1)


def _init_linear(key, out_f, in_f):
    k1, k2 = jax.random.split(key)
    bound = 1.0 / np.sqrt(in_f)
    W = jax.random.uniform(k1, (out_f, in_f), jnp.float32, -bound, bound)
    b = jax.random.uniform(k2, (1, out_f), jnp.float32, -bound, bound)
    return W, b


if __name__ == "__main__":
    key = jax.random.PRNGKey(0)
    k_in, k1, k2, k3, k4, k5 = jax.random.split(key, 6)

    embed_dim = 2 * Q_DIM   # q_dim + len(angular_dims), angular_dims = range(q_dim)
    params = (
        _init_linear(k1, HIDDEN, embed_dim),   # fc1
        _init_linear(k2, HIDDEN, HIDDEN),      # fc2
        _init_linear(k3, Q_DIM, HIDDEN),       # fc_G
        _init_linear(k4, Q_DIM, HIDDEN),       # fc_Ld
        _init_linear(k5, NUM_LO, HIDDEN),      # fc_Lo
    )
    packed = pack_params(params)               # one-time, outside the jitted forward

    xu = jax.random.normal(k_in, (BATCH, 3 * Q_DIM), jnp.float32)   # [q, q_dot, u]

    out = delan_forward(packed, xu)
    jax.block_until_ready(out)
    assert out.shape == (BATCH, 3 * Q_DIM)
    print("KERNEL_OK")
</pallas_src>

<mosaic_0001>
module attributes {stable_mosaic.version = 11 : i64} {
  func.func @_delan_kernel(%arg0: memref<8x12xf32, #tpu.memory_space<vmem>>, %arg1: memref<8x32xf32, #tpu.memory_space<vmem>>, %arg2: memref<32x46xf32, #tpu.memory_space<vmem>>, %arg3: memref<1x78xf32, #tpu.memory_space<vmem>>, %arg4: memref<8x4xf32, #tpu.memory_space<vmem>>) attributes {dimension_semantics = [], scalar_prefetch = 0 : i64, scratch_operands = 0 : i64, tpu.core_type = #tpu.core_type<tc>} {
    %c0 = arith.constant 0 : index
    %c0_0 = arith.constant 0 : index
    %0 = vector.load %arg0[%c0, %c0_0] : memref<8x12xf32, #tpu.memory_space<vmem>>, vector<8x12xf32>
    %1 = vector.extract_strided_slice %0 {offsets = [0, 0], sizes = [8, 4], strides = [1, 1]} : vector<8x12xf32> to vector<8x4xf32>
    %2 = vector.extract_strided_slice %0 {offsets = [0, 4], sizes = [8, 4], strides = [1, 1]} : vector<8x12xf32> to vector<8x4xf32>
    %3 = vector.extract_strided_slice %0 {offsets = [0, 8], sizes = [8, 4], strides = [1, 1]} : vector<8x12xf32> to vector<8x4xf32>
    %c0_1 = arith.constant 0 : index
    %c0_2 = arith.constant 0 : index
    %4 = vector.load %arg1[%c0_1, %c0_2] : memref<8x32xf32, #tpu.memory_space<vmem>>, vector<8x32xf32>
    %c0_3 = arith.constant 0 : index
    %c0_4 = arith.constant 0 : index
    %5 = vector.load %arg2[%c0_3, %c0_4] : memref<32x46xf32, #tpu.memory_space<vmem>>, vector<32x46xf32>
    %6 = vector.extract_strided_slice %5 {offsets = [0, 0], sizes = [32, 32], strides = [1, 1]} : vector<32x46xf32> to vector<32x32xf32>
    %7 = vector.extract_strided_slice %5 {offsets = [0, 32], sizes = [32, 14], strides = [1, 1]} : vector<32x46xf32> to vector<32x14xf32>
    %c0_5 = arith.constant 0 : index
    %c0_6 = arith.constant 0 : index
    %8 = vector.load %arg3[%c0_5, %c0_6] : memref<1x78xf32, #tpu.memory_space<vmem>>, vector<1x78xf32>
    %9 = vector.extract_strided_slice %8 {offsets = [0, 0], sizes = [1, 32], strides = [1, 1]} : vector<1x78xf32> to vector<1x32xf32>
    %10 = vector.extract_strided_slice %8 {offsets = [0, 32], sizes = [1, 32], strides = [1, 1]} : vector<1x78xf32> to vector<1x32xf32>
    %11 = vector.extract_strided_slice %8 {offsets = [0, 64], sizes = [1, 14], strides = [1, 1]} : vector<1x78xf32> to vector<1x14xf32>
    %12 = math.cos %1 : vector<8x4xf32>
    %13 = math.sin %1 : vector<8x4xf32>
    %14 = tpu.concatenate %12, %13 in 1 : vector<8x4xf32>, vector<8x4xf32> -> vector<8x8xf32>
    %cst = arith.constant dense<0.000000e+00> : vector<8x32xf32>
    %15 = tpu.matmul %14, %4, %cst {dimension_numbers = #tpu.dot_dimension_numbers<[1], [0], [0], [1], [0, 0, 1, 1], [], []>} : vector<8x8xf32>, vector<8x32xf32>, vector<8x32xf32> -> vector<8x32xf32>
    %16 = vector.broadcast %9 : vector<1x32xf32> to vector<8x32xf32>
    %17 = arith.addf %15, %16 : vector<8x32xf32>
    %cst_7 = arith.constant 0.000000e+00 : f32
    %18 = vector.broadcast %cst_7 : f32 to vector<8x32xf32>
    %19 = arith.cmpf ogt, %17, %18 : vector<8x32xf32>
    %cst_8 = arith.constant 0.00999999977 : f32
    %20 = vector.broadcast %cst_8 : f32 to vector<8x32xf32>
    %21 = arith.mulf %20, %17 : vector<8x32xf32>
    %22 = arith.select %19, %17, %21 : vector<8x32xi1>, vector<8x32xf32>
    %cst_9 = arith.constant 0.000000e+00 : f32
    %23 = vector.broadcast %cst_9 : f32 to vector<8x32xf32>
    %24 = arith.cmpf ogt, %22, %23 : vector<8x32xf32>
    %cst_10 = arith.constant 1.000000e+00 : f32
    %cst_11 = arith.constant -0.00999999977 : f32
    %25 = vector.broadcast %cst_10 : f32 to vector<8x32xf32>
    %26 = vector.broadcast %cst_11 : f32 to vector<8x32xf32>
    %27 = arith.select %24, %25, %26 : vector<8x32xi1>, vector<8x32xf32>
    %28 = vector.extract_strided_slice %13 {offsets = [0, 0], sizes = [8, 1], strides = [1, 1]} : vector<8x4xf32> to vector<8x1xf32>
    %cst_12 = arith.constant 0.000000e+00 : f32
    %29 = vector.broadcast %cst_12 : f32 to vector<8x1xf32>
    %30 = arith.subf %29, %28 : vector<8x1xf32>
    %31 = vector.extract_strided_slice %4 {offsets = [0, 0], sizes = [1, 32], strides = [1, 1]} : vector<8x32xf32> to vector<1x32xf32>
    %32 = vector.broadcast %30 : vector<8x1xf32> to vector<8x32xf32>
    %33 = vector.broadcast %31 : vector<1x32xf32> to vector<8x32xf32>
    %34 = arith.mulf %32, %33 : vector<8x32xf32>
    %35 = vector.extract_strided_slice %12 {offsets = [0, 0], sizes = [8, 1], strides = [1, 1]} : vector<8x4xf32> to vector<8x1xf32>
    %36 = vector.extract_strided_slice %4 {offsets = [4, 0], sizes = [1, 32], strides = [1, 1]} : vector<8x32xf32> to vector<1x32xf32>
    %37 = vector.broadcast %35 : vector<8x1xf32> to vector<8x32xf32>
    %38 = vector.broadcast %36 : vector<1x32xf32> to vector<8x32xf32>
    %39 = arith.mulf %37, %38 : vector<8x32xf32>
    %40 = arith.addf %34, %39 : vector<8x32xf32>
    %41 = arith.mulf %27, %40 : vector<8x32xf32>
    %42 = vector.extract_strided_slice %13 {offsets = [0, 1], sizes = [8, 1], strides = [1, 1]} : vector<8x4xf32> to vector<8x1xf32>
    %cst_13 = arith.constant 0.000000e+00 : f32
    %43 = vector.broadcast %cst_13 : f32 to vector<8x1xf32>
    %44 = arith.subf %43, %42 : vector<8x1xf32>
    %45 = vector.extract_strided_slice %4 {offsets = [1, 0], sizes = [1, 32], strides = [1, 1]} : vector<8x32xf32> to vector<1x32xf32>
    %46 = vector.broadcast %44 : vector<8x1xf32> to vector<8x32xf32>
    %47 = vector.broadcast %45 : vector<1x32xf32> to vector<8x32xf32>
    %48 = arith.mulf %46, %47 : vector<8x32xf32>
    %49 = vector.extract_strided_slice %12 {offsets = [0, 1], sizes = [8, 1], strides = [1, 1]} : vector<8x4xf32> to vector<8x1xf32>
    %50 = vector.extract_strided_slice %4 {offsets = [5, 0], sizes = [1, 32], strides = [1, 1]} : vector<8x32xf32> to vector<1x32xf32>
    %51 = vector.broadcast %49 : vector<8x1xf32> to vector<8x32xf32>
    %52 = vector.broadcast %50 : vector<1x32xf32> to vector<8x32xf32>
    %53 = arith.mulf %51, %52 : vector<8x32xf32>
    %54 = arith.addf %48, %53 : vector<8x32xf32>
    %55 = arith.mulf %27, %54 : vector<8x32xf32>
    %56 = vector.extract_strided_slice %13 {offsets = [0, 2], sizes = [8, 1], strides = [1, 1]} : vector<8x4xf32> to vector<8x1xf32>
    %cst_14 = arith.constant 0.000000e+00 : f32
    %57 = vector.broadcast %cst_14 : f32 to vector<8x1xf32>
    %58 = arith.subf %57, %56 : vector<8x1xf32>
    %59 = vector.extract_strided_slice %4 {offsets = [2, 0], sizes = [1, 32], strides = [1, 1]} : vector<8x32xf32> to vector<1x32xf32>
    %60 = vector.broadcast %58 : vector<8x1xf32> to vector<8x32xf32>
    %61 = vector.broadcast %59 : vector<1x32xf32> to vector<8x32xf32>
    %62 = arith.mulf %60, %61 : vector<8x32xf32>
    %63 = vector.extract_strided_slice %12 {offsets = [0, 2], sizes = [8, 1], strides = [1, 1]} : vector<8x4xf32> to vector<8x1xf32>
    %64 = vector.extract_strided_slice %4 {offsets = [6, 0], sizes = [1, 32], strides = [1, 1]} : vector<8x32xf32> to vector<1x32xf32>
    %65 = vector.broadcast %63 : vector<8x1xf32> to vector<8x32xf32>
    %66 = vector.broadcast %64 : vector<1x32xf32> to vector<8x32xf32>
    %67 = arith.mulf %65, %66 : vector<8x32xf32>
    %68 = arith.addf %62, %67 : vector<8x32xf32>
    %69 = arith.mulf %27, %68 : vector<8x32xf32>
    %70 = vector.extract_strided_slice %13 {offsets = [0, 3], sizes = [8, 1], strides = [1, 1]} : vector<8x4xf32> to vector<8x1xf32>
    %cst_15 = arith.constant 0.000000e+00 : f32
    %71 = vector.broadcast %cst_15 : f32 to vector<8x1xf32>
    %72 = arith.subf %71, %70 : vector<8x1xf32>
    %73 = vector.extract_strided_slice %4 {offsets = [3, 0], sizes = [1, 32], strides = [1, 1]} : vector<8x32xf32> to vector<1x32xf32>
    %74 = vector.broadcast %72 : vector<8x1xf32> to vector<8x32xf32>
    %75 = vector.broadcast %73 : vector<1x32xf32> to vector<8x32xf32>
    %76 = arith.mulf %74, %75 : vector<8x32xf32>
    %77 = vector.extract_strided_slice %12 {offsets = [0, 3], sizes = [8, 1], strides = [1, 1]} : vector<8x4xf32> to vector<8x1xf32>
    %78 = vector.extract_strided_slice %4 {offsets = [7, 0], sizes = [1, 32], strides = [1, 1]} : vector<8x32xf32> to vector<1x32xf32>
    %79 = vector.broadcast %77 : vector<8x1xf32> to vector<8x32xf32>
    %80 = vector.broadcast %78 : vector<1x32xf32> to vector<8x32xf32>
    %81 = arith.mulf %79, %80 : vector<8x32xf32>
    %82 = arith.addf %76, %81 : vector<8x32xf32>
    %83 = arith.mulf %27, %82 : vector<8x32xf32>
    %84 = tpu.concatenate %22, %41, %55, %69, %83 in 0 : vector<8x32xf32>, vector<8x32xf32>, vector<8x32xf32>, vector<8x32xf32>, vector<8x32xf32> -> vector<40x32xf32>
    %cst_16 = arith.constant dense<0.000000e+00> : vector<40x32xf32>
    %85 = tpu.matmul %84, %6, %cst_16 {dimension_numbers = #tpu.dot_dimension_numbers<[1], [0], [0], [1], [0, 0, 1, 1], [], []>} : vector<40x32xf32>, vector<32x32xf32>, vector<40x32xf32> -> vector<40x32xf32>
    %86 = vector.extract_strided_slice %85 {offsets = [0, 0], sizes = [8, 32], strides = [1, 1]} : vector<40x32xf32> to vector<8x32xf32>
    %87 = vector.broadcast %10 : vector<1x32xf32> to vector<8x32xf32>
    %88 = arith.addf %86, %87 : vector<8x32xf32>
    %cst_17 = arith.constant 0.000000e+00 : f32
    %89 = vector.broadcast %cst_17 : f32 to vector<8x32xf32>
    %90 = arith.cmpf ogt, %88, %89 : vector<8x32xf32>
    %cst_18 = arith.constant 0.00999999977 : f32
    %91 = vector.broadcast %cst_18 : f32 to vector<8x32xf32>
    %92 = arith.mulf %91, %88 : vector<8x32xf32>
    %93 = arith.select %90, %88, %92 : vector<8x32xi1>, vector<8x32xf32>
    %cst_19 = arith.constant 0.000000e+00 : f32
    %94 = vector.broadcast %cst_19 : f32 to vector<8x32xf32>
    %95 = arith.cmpf ogt, %93, %94 : vector<8x32xf32>
    %cst_20 = arith.constant 1.000000e+00 : f32
    %cst_21 = arith.constant -0.00999999977 : f32
    %96 = vector.broadcast %cst_20 : f32 to vector<8x32xf32>
    %97 = vector.broadcast %cst_21 : f32 to vector<8x32xf32>
    %98 = arith.select %95, %96, %97 : vector<8x32xi1>, vector<8x32xf32>
    %99 = vector.extract_strided_slice %85 {offsets = [8, 0], sizes = [8, 32], strides = [1, 1]} : vector<40x32xf32> to vector<8x32xf32>
    %100 = arith.mulf %98, %99 : vector<8x32xf32>
    %101 = vector.extract_strided_slice %85 {offsets = [16, 0], sizes = [8, 32], strides = [1, 1]} : vector<40x32xf32> to vector<8x32xf32>
    %102 = arith.mulf %98, %101 : vector<8x32xf32>
    %103 = vector.extract_strided_slice %85 {offsets = [24, 0], sizes = [8, 32], strides = [1, 1]} : vector<40x32xf32> to vector<8x32xf32>
    %104 = arith.mulf %98, %103 : vector<8x32xf32>
    %105 = vector.extract_strided_slice %85 {offsets = [32, 0], sizes = [8, 32], strides = [1, 1]} : vector<40x32xf32> to vector<8x32xf32>
    %106 = arith.mulf %98, %105 : vector<8x32xf32>
    %107 = tpu.concatenate %93, %100, %102, %104, %106 in 0 : vector<8x32xf32>, vector<8x32xf32>, vector<8x32xf32>, vector<8x32xf32>, vector<8x32xf32> -> vector<40x32xf32>
    %cst_22 = arith.constant dense<0.000000e+00> : vector<40x14xf32>
    %108 = tpu.matmul %107, %7, %cst_22 {dimension_numbers = #tpu.dot_dimension_numbers<[1], [0], [0], [1], [0, 0, 1, 1], [], []>} : vector<40x32xf32>, vector<32x14xf32>, vector<40x14xf32> -> vector<40x14xf32>
    %109 = vector.extract_strided_slice %108 {offsets = [0, 0], sizes = [8, 14], strides = [1, 1]} : vector<40x14xf32> to vector<8x14xf32>
    %110 = vector.broadcast %11 : vector<1x14xf32> to vector<8x14xf32>
    %111 = arith.addf %109, %110 : vector<8x14xf32>
    %112 = vector.extract_strided_slice %111 {offsets = [0, 0], sizes = [8, 4], strides = [1, 1]} : vector<8x14xf32> to vector<8x4xf32>
    %113 = vector.extract_strided_slice %111 {offsets = [0, 4], sizes = [8, 4], strides = [1, 1]} : vector<8x14xf32> to vector<8x4xf32>
    %114 = vector.extract_strided_slice %111 {offsets = [0, 8], sizes = [8, 6], strides = [1, 1]} : vector<8x14xf32> to vector<8x6xf32>
    %cst_23 = arith.constant 2.000000e+01 : f32
    %115 = vector.broadcast %cst_23 : f32 to vector<8x4xf32>
    %116 = arith.minimumf %113, %115 : vector<8x4xf32>
    %117 = math.exp %116 : vector<8x4xf32>
    %cst_24 = arith.constant 2.000000e+01 : f32
    %118 = vector.broadcast %cst_24 : f32 to vector<8x4xf32>
    %119 = arith.cmpf ogt, %113, %118 : vector<8x4xf32>
    %cst_25 = arith.constant 1.000000e+00 : f32
    %120 = vector.broadcast %cst_25 : f32 to vector<8x4xf32>
    %121 = arith.addf %120, %117 : vector<8x4xf32>
    %122 = math.log %121 : vector<8x4xf32>
    %123 = arith.select %119, %113, %122 : vector<8x4xi1>, vector<8x4xf32>
    %cst_26 = arith.constant 1.000000e+00 : f32
    %124 = vector.broadcast %cst_26 : f32 to vector<8x4xf32>
    %125 = arith.addf %124, %117 : vector<8x4xf32>
    %126 = arith.divf %117, %125 : vector<8x4xf32>
    %127 = vector.extract_strided_slice %2 {offsets = [0, 0], sizes = [8, 1], strides = [1, 1]} : vector<8x4xf32> to vector<8x1xf32>
    %128 = vector.extract_strided_slice %2 {offsets = [0, 1], sizes = [8, 1], strides = [1, 1]} : vector<8x4xf32> to vector<8x1xf32>
    %129 = vector.extract_strided_slice %2 {offsets = [0, 2], sizes = [8, 1], strides = [1, 1]} : vector<8x4xf32> to vector<8x1xf32>
    %130 = vector.extract_strided_slice %2 {offsets = [0, 3], sizes = [8, 1], strides = [1, 1]} : vector<8x4xf32> to vector<8x1xf32>
    %131 = vector.extract_strided_slice %123 {offsets = [0, 0], sizes = [8, 1], strides = [1, 1]} : vector<8x4xf32> to vector<8x1xf32>
    %132 = arith.mulf %127, %131 : vector<8x1xf32>
    %133 = vector.extract_strided_slice %114 {offsets = [0, 0], sizes = [8, 1], strides = [1, 1]} : vector<8x6xf32> to vector<8x1xf32>
    %134 = arith.mulf %128, %133 : vector<8x1xf32>
    %135 = arith.addf %132, %134 : vector<8x1xf32>
    %136 = vector.extract_strided_slice %114 {offsets = [0, 1], sizes = [8, 1], strides = [1, 1]} : vector<8x6xf32> to vector<8x1xf32>
    %137 = arith.mulf %129, %136 : vector<8x1xf32>
    %138 = arith.addf %135, %137 : vector<8x1xf32>
    %139 = vector.extract_strided_slice %114 {offsets = [0, 3], sizes = [8, 1], strides = [1, 1]} : vector<8x6xf32> to vector<8x1xf32>
    %140 = arith.mulf %130, %139 : vector<8x1xf32>
    %141 = arith.addf %138, %140 : vector<8x1xf32>
    %142 = vector.extract_strided_slice %123 {offsets = [0, 1], sizes = [8, 1], strides = [1, 1]} : vector<8x4xf32> to vector<8x1xf32>
    %143 = arith.mulf %128, %142 : vector<8x1xf32>
    %144 = vector.extract_strided_slice %114 {offsets = [0, 2], sizes = [8, 1], strides = [1, 1]} : vector<8x6xf32> to vector<8x1xf32>
    %145 = arith.mulf %129, %144 : vector<8x1xf32>
    %146 = arith.addf %143, %145 : vector<8x1xf32>
    %147 = vector.extract_strided_slice %114 {offsets = [0, 4], sizes = [8, 1], strides = [1, 1]} : vector<8x6xf32> to vector<8x1xf32>
    %148 = arith.mulf %130, %147 : vector<8x1xf32>
    %149 = arith.addf %146, %148 : vector<8x1xf32>
    %150 = vector.extract_strided_slice %123 {offsets = [0, 2], sizes = [8, 1], strides = [1, 1]} : vector<8x4xf32> to vector<8x1xf32>
    %151 = arith.mulf %129, %150 : vector<8x1xf32>
    %152 = vector.extract_strided_slice %114 {offsets = [0, 5], sizes = [8, 1], strides = [1, 1]} : vector<8x6xf32> to vector<8x1xf32>
    %153 = arith.mulf %130, %152 : vector<8x1xf32>
    %154 = arith.addf %151, %153 : vector<8x1xf32>
    %155 = vector.extract_strided_slice %123 {offsets = [0, 3], sizes = [8, 1], strides = [1, 1]} : vector<8x4xf32> to vector<8x1xf32>
    %156 = arith.mulf %130, %155 : vector<8x1xf32>
    %157 = tpu.concatenate %2, %141, %149, %154, %156 in 1 : vector<8x4xf32>, vector<8x1xf32>, vector<8x1xf32>, vector<8x1xf32>, vector<8x1xf32> -> vector<8x8xf32>
    %158 = tpu.iota {dimensions = array<i32: 0>} : vector<8x1xi32>
    %c2_i32 = arith.constant 2 : i32
    %c0_i32 = arith.constant 0 : i32
    %159 = arith.cmpi eq, %c2_i32, %c0_i32 : i32
    %c1_i32 = arith.constant 1 : i32
    %160 = arith.select %159, %c1_i32, %c2_i32 : i32
    %161 = vector.broadcast %160 : i32 to vector<8x1xi32>
    %162 = arith.remsi %158, %161 : vector<8x1xi32>
    %c0_i32_27 = arith.constant 0 : i32
    %163 = vector.broadcast %c0_i32_27 : i32 to vector<8x1xi32>
    %164 = arith.cmpi ne, %162, %163 : vector<8x1xi32>
    %c0_i32_28 = arith.constant 0 : i32
    %165 = vector.broadcast %c0_i32_28 : i32 to vector<8x1xi32>
    %166 = arith.cmpi slt, %162, %165 : vector<8x1xi32>
    %c0_i32_29 = arith.constant 0 : i32
    %167 = arith.cmpi slt, %160, %c0_i32_29 : i32
    %168 = vector.broadcast %167 : i1 to vector<8x1xi1>
    %169 = vector.broadcast %168 : vector<8x1xi1> to vector<8x1xi1>
    %170 = arith.xori %166, %169 : vector<8x1xi1>
    %171 = arith.andi %170, %164 : vector<8x1xi1>
    %172 = vector.broadcast %160 : i32 to vector<8x1xi32>
    %173 = arith.addi %162, %172 : vector<8x1xi32>
    %174 = arith.select %171, %173, %162 : vector<8x1xi1>, vector<8x1xi32>
    %cst_30 = arith.constant 0.000000e+00 : f32
    %175 = vector.broadcast %cst_30 : f32 to vector<8x4xf32>
    %cst_31 = arith.constant 0.000000e+00 : f32
    %176 = vector.broadcast %cst_31 : f32 to vector<8x6xf32>
    %177 = vector.extract_strided_slice %108 {offsets = [8, 0], sizes = [8, 14], strides = [1, 1]} : vector<40x14xf32> to vector<8x14xf32>
    %178 = vector.extract_strided_slice %177 {offsets = [0, 4], sizes = [8, 4], strides = [1, 1]} : vector<8x14xf32> to vector<8x4xf32>
    %179 = arith.mulf %126, %178 : vector<8x4xf32>
    %180 = vector.extract_strided_slice %177 {offsets = [0, 8], sizes = [8, 6], strides = [1, 1]} : vector<8x14xf32> to vector<8x6xf32>
    %181 = vector.broadcast %127 : vector<8x1xf32> to vector<8x4xf32>
    %182 = arith.mulf %179, %181 : vector<8x4xf32>
    %183 = arith.addf %175, %182 : vector<8x4xf32>
    %184 = vector.broadcast %127 : vector<8x1xf32> to vector<8x6xf32>
    %185 = arith.mulf %180, %184 : vector<8x6xf32>
    %186 = arith.addf %176, %185 : vector<8x6xf32>
    %cst_32 = arith.constant 0.000000e+00 : f32
    %187 = vector.broadcast %cst_32 : f32 to vector<8x8xf32>
    %c0_i32_33 = arith.constant 0 : i32
    %188 = vector.broadcast %c0_i32_33 : i32 to vector<8x1xi32>
    %189 = arith.cmpi eq, %174, %188 : vector<8x1xi32>
    %190 = vector.extract_strided_slice %157 {offsets = [0, 0], sizes = [1, 8], strides = [1, 1]} : vector<8x8xf32> to vector<1x8xf32>
    %191 = vector.shape_cast %189 : vector<8x1xi1> to vector<8x1xi1>
    %192 = vector.broadcast %191 : vector<8x1xi1> to vector<8x8xi1>
    %193 = vector.shape_cast %190 : vector<1x8xf32> to vector<1x8xf32>
    %194 = vector.broadcast %193 : vector<1x8xf32> to vector<8x8xf32>
    %195 = arith.select %192, %194, %187 : vector<8x8xi1>, vector<8x8xf32>
    %c1_i32_34 = arith.constant 1 : i32
    %196 = vector.broadcast %c1_i32_34 : i32 to vector<8x1xi32>
    %197 = arith.cmpi eq, %174, %196 : vector<8x1xi32>
    %198 = vector.extract_strided_slice %157 {offsets = [4, 0], sizes = [1, 8], strides = [1, 1]} : vector<8x8xf32> to vector<1x8xf32>
    %199 = vector.shape_cast %197 : vector<8x1xi1> to vector<8x1xi1>
    %200 = vector.broadcast %199 : vector<8x1xi1> to vector<8x8xi1>
    %201 = vector.shape_cast %198 : vector<1x8xf32> to vector<1x8xf32>
    %202 = vector.broadcast %201 : vector<1x8xf32> to vector<8x8xf32>
    %203 = arith.select %200, %202, %195 : vector<8x8xi1>, vector<8x8xf32>
    %204 = vector.extract_strided_slice %203 {offsets = [0, 0], sizes = [8, 1], strides = [1, 1]} : vector<8x8xf32> to vector<8x1xf32>
    %205 = vector.extract_strided_slice %179 {offsets = [0, 0], sizes = [8, 1], strides = [1, 1]} : vector<8x4xf32> to vector<8x1xf32>
    %206 = arith.mulf %204, %205 : vector<8x1xf32>
    %207 = vector.extract_strided_slice %203 {offsets = [0, 1], sizes = [8, 1], strides = [1, 1]} : vector<8x8xf32> to vector<8x1xf32>
    %208 = vector.extract_strided_slice %108 {offsets = [8, 8], sizes = [8, 1], strides = [1, 1]} : vector<40x14xf32> to vector<8x1xf32>
    %209 = arith.mulf %207, %208 : vector<8x1xf32>
    %210 = arith.addf %206, %209 : vector<8x1xf32>
    %211 = vector.extract_strided_slice %203 {offsets = [0, 2], sizes = [8, 1], strides = [1, 1]} : vector<8x8xf32> to vector<8x1xf32>
    %212 = vector.extract_strided_slice %108 {offsets = [16, 8], sizes = [8, 1], strides = [1, 1]} : vector<40x14xf32> to vector<8x1xf32>
    %213 = arith.mulf %211, %212 : vector<8x1xf32>
    %214 = arith.addf %210, %213 : vector<8x1xf32>
    %215 = vector.extract_strided_slice %203 {offsets = [0, 3], sizes = [8, 1], strides = [1, 1]} : vector<8x8xf32> to vector<8x1xf32>
    %216 = vector.extract_strided_slice %108 {offsets = [32, 8], sizes = [8, 1], strides = [1, 1]} : vector<40x14xf32> to vector<8x1xf32>
    %217 = arith.mulf %215, %216 : vector<8x1xf32>
    %218 = arith.addf %214, %217 : vector<8x1xf32>
    %219 = vector.extract_strided_slice %203 {offsets = [0, 4], sizes = [8, 1], strides = [1, 1]} : vector<8x8xf32> to vector<8x1xf32>
    %220 = arith.mulf %218, %219 : vector<8x1xf32>
    %221 = vector.extract_strided_slice %203 {offsets = [0, 1], sizes = [8, 1], strides = [1, 1]} : vector<8x8xf32> to vector<8x1xf32>
    %222 = vector.extract_strided_slice %179 {offsets = [0, 1], sizes = [8, 1], strides = [1, 1]} : vector<8x4xf32> to vector<8x1xf32>
    %223 = arith.mulf %221, %222 : vector<8x1xf32>
    %224 = vector.extract_strided_slice %203 {offsets = [0, 2], sizes = [8, 1], strides = [1, 1]} : vector<8x8xf32> to vector<8x1xf32>
    %225 = vector.extract_strided_slice %108 {offsets = [24, 8], sizes = [8, 1], strides = [1, 1]} : vector<40x14xf32> to vector<8x1xf32>
    %226 = arith.mulf %224, %225 : vector<8x1xf32>
    %227 = arith.addf %223, %226 : vector<8x1xf32>
    %228 = vector.extract_strided_slice %203 {offsets = [0, 3], sizes = [8, 1], strides = [1, 1]} : vector<8x8xf32> to vector<8x1xf32>
    %229 = vector.extract_strided_slice %108 {offsets = [8, 9], sizes = [8, 1], strides = [1, 1]} : vector<40x14xf32> to vector<8x1xf32>
    %230 = arith.mulf %228, %229 : vector<8x1xf32>
    %231 = arith.addf %227, %230 : vector<8x1xf32>
    %232 = vector.extract_strided_slice %203 {offsets = [0, 5], sizes = [8, 1], strides = [1, 1]} : vector<8x8xf32> to vector<8x1xf32>
    %233 = arith.mulf %231, %232 : vector<8x1xf32>
    %234 = arith.addf %220, %233 : vector<8x1xf32>
    %235 = vector.extract_strided_slice %203 {offsets = [0, 2], sizes = [8, 1], strides = [1, 1]} : vector<8x8xf32> to vector<8x1xf32>
    %236 = vector.extract_strided_slice %179 {offsets = [0, 2], sizes = [8, 1], strides = [1, 1]} : vector<8x4xf32> to vector<8x1xf32>
    %237 = arith.mulf %235, %236 : vector<8x1xf32>
    %238 = vector.extract_strided_slice %203 {offsets = [0, 3], sizes = [8, 1], strides = [1, 1]} : vector<8x8xf32> to vector<8x1xf32>
    %239 = vector.extract_strided_slice %108 {offsets = [16, 9], sizes = [8, 1], strides = [1, 1]} : vector<40x14xf32> to vector<8x1xf32>
    %240 = arith.mulf %238, %239 : vector<8x1xf32>
    %241 = arith.addf %237, %240 : vector<8x1xf32>
    %242 = vector.extract_strided_slice %203 {offsets = [0, 6], sizes = [8, 1], strides = [1, 1]} : vector<8x8xf32> to vector<8x1xf32>
    %243 = arith.mulf %241, %242 : vector<8x1xf32>
    %244 = arith.addf %234, %243 : vector<8x1xf32>
    %245 = vector.extract_strided_slice %203 {offsets = [0, 3], sizes = [8, 1], strides = [1, 1]} : vector<8x8xf32> to vector<8x1xf32>
    %246 = vector.extract_strided_slice %179 {offsets = [0, 3], sizes = [8, 1], strides = [1, 1]} : vector<8x4xf32> to vector<8x1xf32>
    %247 = arith.mulf %245, %246 : vector<8x1xf32>
    %248 = vector.extract_strided_slice %203 {offsets = [0, 7], sizes = [8, 1], strides = [1, 1]} : vector<8x8xf32> to vector<8x1xf32>
    %249 = arith.mulf %247, %248 : vector<8x1xf32>
    %250 = arith.addf %244, %249 : vector<8x1xf32>
    %cst_35 = arith.constant 2.000000e+00 : f32
    %251 = vector.broadcast %cst_35 : f32 to vector<8x1xf32>
    %252 = arith.mulf %251, %250 : vector<8x1xf32>
    %253 = vector.extract_strided_slice %108 {offsets = [16, 0], sizes = [8, 14], strides = [1, 1]} : vector<40x14xf32> to vector<8x14xf32>
    %254 = vector.extract_strided_slice %253 {offsets = [0, 4], sizes = [8, 4], strides = [1, 1]} : vector<8x14xf32> to vector<8x4xf32>
    %255 = arith.mulf %126, %254 : vector<8x4xf32>
    %256 = vector.extract_strided_slice %253 {offsets = [0, 8], sizes = [8, 6], strides = [1, 1]} : vector<8x14xf32> to vector<8x6xf32>
    %257 = vector.broadcast %128 : vector<8x1xf32> to vector<8x4xf32>
    %258 = arith.mulf %255, %257 : vector<8x4xf32>
    %259 = arith.addf %183, %258 : vector<8x4xf32>
    %260 = vector.broadcast %128 : vector<8x1xf32> to vector<8x6xf32>
    %261 = arith.mulf %256, %260 : vector<8x6xf32>
    %262 = arith.addf %186, %261 : vector<8x6xf32>
    %cst_36 = arith.constant 0.000000e+00 : f32
    %263 = vector.broadcast %cst_36 : f32 to vector<8x8xf32>
    %c0_i32_37 = arith.constant 0 : i32
    %264 = vector.broadcast %c0_i32_37 : i32 to vector<8x1xi32>
    %265 = arith.cmpi eq, %174, %264 : vector<8x1xi32>
    %266 = vector.extract_strided_slice %157 {offsets = [1, 0], sizes = [1, 8], strides = [1, 1]} : vector<8x8xf32> to vector<1x8xf32>
    %267 = vector.shape_cast %265 : vector<8x1xi1> to vector<8x1xi1>
    %268 = vector.broadcast %267 : vector<8x1xi1> to vector<8x8xi1>
    %269 = vector.shape_cast %266 : vector<1x8xf32> to vector<1x8xf32>
    %270 = vector.broadcast %269 : vector<1x8xf32> to vector<8x8xf32>
    %271 = arith.select %268, %270, %263 : vector<8x8xi1>, vector<8x8xf32>
    %c1_i32_38 = arith.constant 1 : i32
    %272 = vector.broadcast %c1_i32_38 : i32 to vector<8x1xi32>
    %273 = arith.cmpi eq, %174, %272 : vector<8x1xi32>
    %274 = vector.extract_strided_slice %157 {offsets = [5, 0], sizes = [1, 8], strides = [1, 1]} : vector<8x8xf32> to vector<1x8xf32>
    %275 = vector.shape_cast %273 : vector<8x1xi1> to vector<8x1xi1>
    %276 = vector.broadcast %275 : vector<8x1xi1> to vector<8x8xi1>
    %277 = vector.shape_cast %274 : vector<1x8xf32> to vector<1x8xf32>
    %278 = vector.broadcast %277 : vector<1x8xf32> to vector<8x8xf32>
    %279 = arith.select %276, %278, %271 : vector<8x8xi1>, vector<8x8xf32>
    %280 = vector.extract_strided_slice %279 {offsets = [0, 0], sizes = [8, 1], strides = [1, 1]} : vector<8x8xf32> to vector<8x1xf32>
    %281 = vector.extract_strided_slice %255 {offsets = [0, 0], sizes = [8, 1], strides = [1, 1]} : vector<8x4xf32> to vector<8x1xf32>
    %282 = arith.mulf %280, %281 : vector<8x1xf32>
    %283 = vector.extract_strided_slice %279 {offsets = [0, 1], sizes = [8, 1], strides = [1, 1]} : vector<8x8xf32> to vector<8x1xf32>
    %284 = vector.extract_strided_slice %108 {offsets = [24, 9], sizes = [8, 1], strides = [1, 1]} : vector<40x14xf32> to vector<8x1xf32>
    %285 = arith.mulf %283, %284 : vector<8x1xf32>
    %286 = arith.addf %282, %285 : vector<8x1xf32>
    %287 = vector.extract_strided_slice %279 {offsets = [0, 2], sizes = [8, 1], strides = [1, 1]} : vector<8x8xf32> to vector<8x1xf32>
    %288 = vector.extract_strided_slice %108 {offsets = [32, 9], sizes = [8, 1], strides = [1, 1]} : vector<40x14xf32> to vector<8x1xf32>
    %289 = arith.mulf %287, %288 : vector<8x1xf32>
    %290 = arith.addf %286, %289 : vector<8x1xf32>
    %291 = vector.extract_strided_slice %279 {offsets = [0, 3], sizes = [8, 1], strides = [1, 1]} : vector<8x8xf32> to vector<8x1xf32>
    %292 = vector.extract_strided_slice %108 {offsets = [16, 10], sizes = [8, 1], strides = [1, 1]} : vector<40x14xf32> to vector<8x1xf32>
    %293 = arith.mulf %291, %292 : vector<8x1xf32>
    %294 = arith.addf %290, %293 : vector<8x1xf32>
    %295 = vector.extract_strided_slice %279 {offsets = [0, 4], sizes = [8, 1], strides = [1, 1]} : vector<8x8xf32> to vector<8x1xf32>
    %296 = arith.mulf %294, %295 : vector<8x1xf32>
    %297 = vector.extract_strided_slice %279 {offsets = [0, 1], sizes = [8, 1], strides = [1, 1]} : vector<8x8xf32> to vector<8x1xf32>
    %298 = vector.extract_strided_slice %255 {offsets = [0, 1], sizes = [8, 1], strides = [1, 1]} : vector<8x4xf32> to vector<8x1xf32>
    %299 = arith.mulf %297, %298 : vector<8x1xf32>
    %300 = vector.extract_strided_slice %279 {offsets = [0, 2], sizes = [8, 1], strides = [1, 1]} : vector<8x8xf32> to vector<8x1xf32>
    %301 = vector.extract_strided_slice %108 {offsets = [8, 10], sizes = [8, 1], strides = [1, 1]} : vector<40x14xf32> to vector<8x1xf32>
    %302 = arith.mulf %300, %301 : vector<8x1xf32>
    %303 = arith.addf %299, %302 : vector<8x1xf32>
    %304 = vector.extract_strided_slice %279 {offsets = [0, 3], sizes = [8, 1], strides = [1, 1]} : vector<8x8xf32> to vector<8x1xf32>
    %305 = vector.extract_strided_slice %108 {offsets = [24, 10], sizes = [8, 1], strides = [1, 1]} : vector<40x14xf32> to vector<8x1xf32>
    %306 = arith.mulf %304, %305 : vector<8x1xf32>
    %307 = arith.addf %303, %306 : vector<8x1xf32>
    %308 = vector.extract_strided_slice %279 {offsets = [0, 5], sizes = [8, 1], strides = [1, 1]} : vector<8x8xf32> to vector<8x1xf32>
    %309 = arith.mulf %307, %308 : vector<8x1xf32>
    %310 = arith.addf %296, %309 : vector<8x1xf32>
    %311 = vector.extract_strided_slice %279 {offsets = [0, 2], sizes = [8, 1], strides = [1, 1]} : vector<8x8xf32> to vector<8x1xf32>
    %312 = vector.extract_strided_slice %255 {offsets = [0, 2], sizes = [8, 1], strides = [1, 1]} : vector<8x4xf32> to vector<8x1xf32>
    %313 = arith.mulf %311, %312 : vector<8x1xf32>
    %314 = vector.extract_strided_slice %279 {offsets = [0, 3], sizes = [8, 1], strides = [1, 1]} : vector<8x8xf32> to vector<8x1xf32>
    %315 = vector.extract_strided_slice %108 {offsets = [32, 10], sizes = [8, 1], strides = [1, 1]} : vector<40x14xf32> to vector<8x1xf32>
    %316 = arith.mulf %314, %315 : vector<8x1xf32>
    %317 = arith.addf %313, %316 : vector<8x1xf32>
    %318 = vector.extract_strided_slice %279 {offsets = [0, 6], sizes = [8, 1], strides = [1, 1]} : vector<8x8xf32> to vector<8x1xf32>
    %319 = arith.mulf %317, %318 : vector<8x1xf32>
    %320 = arith.addf %310, %319 : vector<8x1xf32>
    %321 = vector.extract_strided_slice %279 {offsets = [0, 3], sizes = [8, 1], strides = [1, 1]} : vector<8x8xf32> to vector<8x1xf32>
    %322 = vector.extract_strided_slice %255 {offsets = [0, 3], sizes = [8, 1], strides = [1, 1]} : vector<8x4xf32> to vector<8x1xf32>
    %323 = arith.mulf %321, %322 : vector<8x1xf32>
    %324 = vector.extract_strided_slice %279 {offsets = [0, 7], sizes = [8, 1], strides = [1, 1]} : vector<8x8xf32> to vector<8x1xf32>
    %325 = arith.mulf %323, %324 : vector<8x1xf32>
    %326 = arith.addf %320, %325 : vector<8x1xf32>
    %cst_39 = arith.constant 2.000000e+00 : f32
    %327 = vector.broadcast %cst_39 : f32 to vector<8x1xf32>
    %328 = arith.mulf %327, %326 : vector<8x1xf32>
    %329 = vector.extract_strided_slice %108 {offsets = [24, 0], sizes = [8, 14], strides = [1, 1]} : vector<40x14xf32> to vector<8x14xf32>
    %330 = vector.extract_strided_slice %329 {offsets = [0, 4], sizes = [8, 4], strides = [1, 1]} : vector<8x14xf32> to vector<8x4xf32>
    %331 = arith.mulf %126, %330 : vector<8x4xf32>
    %332 = vector.extract_strided_slice %329 {offsets = [0, 8], sizes = [8, 6], strides = [1, 1]} : vector<8x14xf32> to vector<8x6xf32>
    %333 = vector.broadcast %129 : vector<8x1xf32> to vector<8x4xf32>
    %334 = arith.mulf %331, %333 : vector<8x4xf32>
    %335 = arith.addf %259, %334 : vector<8x4xf32>
    %336 = vector.broadcast %129 : vector<8x1xf32> to vector<8x6xf32>
    %337 = arith.mulf %332, %336 : vector<8x6xf32>
    %338 = arith.addf %262, %337 : vector<8x6xf32>
    %cst_40 = arith.constant 0.000000e+00 : f32
    %339 = vector.broadcast %cst_40 : f32 to vector<8x8xf32>
    %c0_i32_41 = arith.constant 0 : i32
    %340 = vector.broadcast %c0_i32_41 : i32 to vector<8x1xi32>
    %341 = arith.cmpi eq, %174, %340 : vector<8x1xi32>
    %342 = vector.extract_strided_slice %157 {offsets = [2, 0], sizes = [1, 8], strides = [1, 1]} : vector<8x8xf32> to vector<1x8xf32>
    %343 = vector.shape_cast %341 : vector<8x1xi1> to vector<8x1xi1>
    %344 = vector.broadcast %343 : vector<8x1xi1> to vector<8x8xi1>
    %345 = vector.shape_cast %342 : vector<1x8xf32> to vector<1x8xf32>
    %346 = vector.broadcast %345 : vector<1x8xf32> to vector<8x8xf32>
    %347 = arith.select %344, %346, %339 : vector<8x8xi1>, vector<8x8xf32>
    %c1_i32_42 = arith.constant 1 : i32
    %348 = vector.broadcast %c1_i32_42 : i32 to vector<8x1xi32>
    %349 = arith.cmpi eq, %174, %348 : vector<8x1xi32>
    %350 = vector.extract_strided_slice %157 {offsets = [6, 0], sizes = [1, 8], strides = [1, 1]} : vector<8x8xf32> to vector<1x8xf32>
    %351 = vector.shape_cast %349 : vector<8x1xi1> to vector<8x1xi1>
    %352 = vector.broadcast %351 : vector<8x1xi1> to vector<8x8xi1>
    %353 = vector.shape_cast %350 : vector<1x8xf32> to vector<1x8xf32>
    %354 = vector.broadcast %353 : vector<1x8xf32> to vector<8x8xf32>
    %355 = arith.select %352, %354, %347 : vector<8x8xi1>, vector<8x8xf32>
    %356 = vector.extract_strided_slice %355 {offsets = [0, 0], sizes = [8, 1], strides = [1, 1]} : vector<8x8xf32> to vector<8x1xf32>
    %357 = vector.extract_strided_slice %331 {offsets = [0, 0], sizes = [8, 1], strides = [1, 1]} : vector<8x4xf32> to vector<8x1xf32>
    %358 = arith.mulf %356, %357 : vector<8x1xf32>
    %359 = vector.extract_strided_slice %355 {offsets = [0, 1], sizes = [8, 1], strides = [1, 1]} : vector<8x8xf32> to vector<8x1xf32>
    %360 = vector.extract_strided_slice %108 {offsets = [8, 11], sizes = [8, 1], strides = [1, 1]} : vector<40x14xf32> to vector<8x1xf32>
    %361 = arith.mulf %359, %360 : vector<8x1xf32>
    %362 = arith.addf %358, %361 : vector<8x1xf32>
    %363 = vector.extract_strided_slice %355 {offsets = [0, 2], sizes = [8, 1], strides = [1, 1]} : vector<8x8xf32> to vector<8x1xf32>
    %364 = vector.extract_strided_slice %108 {offsets = [16, 11], sizes = [8, 1], strides = [1, 1]} : vector<40x14xf32> to vector<8x1xf32>
    %365 = arith.mulf %363, %364 : vector<8x1xf32>
    %366 = arith.addf %362, %365 : vector<8x1xf32>
    %367 = vector.extract_strided_slice %355 {offsets = [0, 3], sizes = [8, 1], strides = [1, 1]} : vector<8x8xf32> to vector<8x1xf32>
    %368 = vector.extract_strided_slice %108 {offsets = [32, 11], sizes = [8, 1], strides = [1, 1]} : vector<40x14xf32> to vector<8x1xf32>
    %369 = arith.mulf %367, %368 : vector<8x1xf32>
    %370 = arith.addf %366, %369 : vector<8x1xf32>
    %371 = vector.extract_strided_slice %355 {offsets = [0, 4], sizes = [8, 1], strides = [1, 1]} : vector<8x8xf32> to vector<8x1xf32>
    %372 = arith.mulf %370, %371 : vector<8x1xf32>
    %373 = vector.extract_strided_slice %355 {offsets = [0, 1], sizes = [8, 1], strides = [1, 1]} : vector<8x8xf32> to vector<8x1xf32>
    %374 = vector.extract_strided_slice %331 {offsets = [0, 1], sizes = [8, 1], strides = [1, 1]} : vector<8x4xf32> to vector<8x1xf32>
    %375 = arith.mulf %373, %374 : vector<8x1xf32>
    %376 = vector.extract_strided_slice %355 {offsets = [0, 2], sizes = [8, 1], strides = [1, 1]} : vector<8x8xf32> to vector<8x1xf32>
    %377 = vector.extract_strided_slice %108 {offsets = [24, 11], sizes = [8, 1], strides = [1, 1]} : vector<40x14xf32> to vector<8x1xf32>
    %378 = arith.mulf %376, %377 : vector<8x1xf32>
    %379 = arith.addf %375, %378 : vector<8x1xf32>
    %380 = vector.extract_strided_slice %355 {offsets = [0, 3], sizes = [8, 1], strides = [1, 1]} : vector<8x8xf32> to vector<8x1xf32>
    %381 = vector.extract_strided_slice %108 {offsets = [8, 12], sizes = [8, 1], strides = [1, 1]} : vector<40x14xf32> to vector<8x1xf32>
    %382 = arith.mulf %380, %381 : vector<8x1xf32>
    %383 = arith.addf %379, %382 : vector<8x1xf32>
    %384 = vector.extract_strided_slice %355 {offsets = [0, 5], sizes = [8, 1], strides = [1, 1]} : vector<8x8xf32> to vector<8x1xf32>
    %385 = arith.mulf %383, %384 : vector<8x1xf32>
    %386 = arith.addf %372, %385 : vector<8x1xf32>
    %387 = vector.extract_strided_slice %355 {offsets = [0, 2], sizes = [8, 1], strides = [1, 1]} : vector<8x8xf32> to vector<8x1xf32>
    %388 = vector.extract_strided_slice %331 {offsets = [0, 2], sizes = [8, 1], strides = [1, 1]} : vector<8x4xf32> to vector<8x1xf32>
    %389 = arith.mulf %387, %388 : vector<8x1xf32>
    %390 = vector.extract_strided_slice %355 {offsets = [0, 3], sizes = [8, 1], strides = [1, 1]} : vector<8x8xf32> to vector<8x1xf32>
    %391 = vector.extract_strided_slice %108 {offsets = [16, 12], sizes = [8, 1], strides = [1, 1]} : vector<40x14xf32> to vector<8x1xf32>
    %392 = arith.mulf %390, %391 : vector<8x1xf32>
    %393 = arith.addf %389, %392 : vector<8x1xf32>
    %394 = vector.extract_strided_slice %355 {offsets = [0, 6], sizes = [8, 1], strides = [1, 1]} : vector<8x8xf32> to vector<8x1xf32>
    %395 = arith.mulf %393, %394 : vector<8x1xf32>
    %396 = arith.addf %386, %395 : vector<8x1xf32>
    %397 = vector.extract_strided_slice %355 {offsets = [0, 3], sizes = [8, 1], strides = [1, 1]} : vector<8x8xf32> to vector<8x1xf32>
    %398 = vector.extract_strided_slice %331 {offsets = [0, 3], sizes = [8, 1], strides = [1, 1]} : vector<8x4xf32> to vector<8x1xf32>
    %399 = arith.mulf %397, %398 : vector<8x1xf32>
    %400 = vector.extract_strided_slice %355 {offsets = [0, 7], sizes = [8, 1], strides = [1, 1]} : vector<8x8xf32> to vector<8x1xf32>
    %401 = arith.mulf %399, %400 : vector<8x1xf32>
    %402 = arith.addf %396, %401 : vector<8x1xf32>
    %cst_43 = arith.constant 2.000000e+00 : f32
    %403 = vector.broadcast %cst_43 : f32 to vector<8x1xf32>
    %404 = arith.mulf %403, %402 : vector<8x1xf32>
    %405 = vector.extract_strided_slice %108 {offsets = [32, 0], sizes = [8, 14], strides = [1, 1]} : vector<40x14xf32> to vector<8x14xf32>
    %406 = vector.extract_strided_slice %405 {offsets = [0, 4], sizes = [8, 4], strides = [1, 1]} : vector<8x14xf32> to vector<8x4xf32>
    %407 = arith.mulf %126, %406 : vector<8x4xf32>
    %408 = vector.extract_strided_slice %405 {offsets = [0, 8], sizes = [8, 6], strides = [1, 1]} : vector<8x14xf32> to vector<8x6xf32>
    %409 = vector.broadcast %130 : vector<8x1xf32> to vector<8x4xf32>
    %410 = arith.mulf %407, %409 : vector<8x4xf32>
    %411 = arith.addf %335, %410 : vector<8x4xf32>
    %412 = vector.broadcast %130 : vector<8x1xf32> to vector<8x6xf32>
    %413 = arith.mulf %408, %412 : vector<8x6xf32>
    %414 = arith.addf %338, %413 : vector<8x6xf32>
    %cst_44 = arith.constant 0.000000e+00 : f32
    %415 = vector.broadcast %cst_44 : f32 to vector<8x8xf32>
    %c0_i32_45 = arith.constant 0 : i32
    %416 = vector.broadcast %c0_i32_45 : i32 to vector<8x1xi32>
    %417 = arith.cmpi eq, %174, %416 : vector<8x1xi32>
    %418 = vector.extract_strided_slice %157 {offsets = [3, 0], sizes = [1, 8], strides = [1, 1]} : vector<8x8xf32> to vector<1x8xf32>
    %419 = vector.shape_cast %417 : vector<8x1xi1> to vector<8x1xi1>
    %420 = vector.broadcast %419 : vector<8x1xi1> to vector<8x8xi1>
    %421 = vector.shape_cast %418 : vector<1x8xf32> to vector<1x8xf32>
    %422 = vector.broadcast %421 : vector<1x8xf32> to vector<8x8xf32>
    %423 = arith.select %420, %422, %415 : vector<8x8xi1>, vector<8x8xf32>
    %c1_i32_46 = arith.constant 1 : i32
    %424 = vector.broadcast %c1_i32_46 : i32 to vector<8x1xi32>
    %425 = arith.cmpi eq, %174, %424 : vector<8x1xi32>
    %426 = vector.extract_strided_slice %157 {offsets = [7, 0], sizes = [1, 8], strides = [1, 1]} : vector<8x8xf32> to vector<1x8xf32>
    %427 = vector.shape_cast %425 : vector<8x1xi1> to vector<8x1xi1>
    %428 = vector.broadcast %427 : vector<8x1xi1> to vector<8x8xi1>
    %429 = vector.shape_cast %426 : vector<1x8xf32> to vector<1x8xf32>
    %430 = vector.broadcast %429 : vector<1x8xf32> to vector<8x8xf32>
    %431 = arith.select %428, %430, %423 : vector<8x8xi1>, vector<8x8xf32>
    %432 = vector.extract_strided_slice %431 {offsets = [0, 0], sizes = [8, 1], strides = [1, 1]} : vector<8x8xf32> to vector<8x1xf32>
    %433 = vector.extract_strided_slice %407 {offsets = [0, 0], sizes = [8, 1], strides = [1, 1]} : vector<8x4xf32> to vector<8x1xf32>
    %434 = arith.mulf %432, %433 : vector<8x1xf32>
    %435 = vector.extract_strided_slice %431 {offsets = [0, 1], sizes = [8, 1], strides = [1, 1]} : vector<8x8xf32> to vector<8x1xf32>
    %436 = vector.extract_strided_slice %108 {offsets = [24, 12], sizes = [8, 1], strides = [1, 1]} : vector<40x14xf32> to vector<8x1xf32>
    %437 = arith.mulf %435, %436 : vector<8x1xf32>
    %438 = arith.addf %434, %437 : vector<8x1xf32>
    %439 = vector.extract_strided_slice %431 {offsets = [0, 2], sizes = [8, 1], strides = [1, 1]} : vector<8x8xf32> to vector<8x1xf32>
    %440 = vector.extract_strided_slice %108 {offsets = [32, 12], sizes = [8, 1], strides = [1, 1]} : vector<40x14xf32> to vector<8x1xf32>
    %441 = arith.mulf %439, %440 : vector<8x1xf32>
    %442 = arith.addf %438, %441 : vector<8x1xf32>
    %443 = vector.extract_strided_slice %431 {offsets = [0, 3], sizes = [8, 1], strides = [1, 1]} : vector<8x8xf32> to vector<8x1xf32>
    %444 = vector.extract_strided_slice %108 {offsets = [16, 13], sizes = [8, 1], strides = [1, 1]} : vector<40x14xf32> to vector<8x1xf32>
    %445 = arith.mulf %443, %444 : vector<8x1xf32>
    %446 = arith.addf %442, %445 : vector<8x1xf32>
    %447 = vector.extract_strided_slice %431 {offsets = [0, 4], sizes = [8, 1], strides = [1, 1]} : vector<8x8xf32> to vector<8x1xf32>
    %448 = arith.mulf %446, %447 : vector<8x1xf32>
    %449 = vector.extract_strided_slice %431 {offsets = [0, 1], sizes = [8, 1], strides = [1, 1]} : vector<8x8xf32> to vector<8x1xf32>
    %450 = vector.extract_strided_slice %407 {offsets = [0, 1], sizes = [8, 1], strides = [1, 1]} : vector<8x4xf32> to vector<8x1xf32>
    %451 = arith.mulf %449, %450 : vector<8x1xf32>
    %452 = vector.extract_strided_slice %431 {offsets = [0, 2], sizes = [8, 1], strides = [1, 1]} : vector<8x8xf32> to vector<8x1xf32>
    %453 = vector.extract_strided_slice %108 {offsets = [8, 13], sizes = [8, 1], strides = [1, 1]} : vector<40x14xf32> to vector<8x1xf32>
    %454 = arith.mulf %452, %453 : vector<8x1xf32>
    %455 = arith.addf %451, %454 : vector<8x1xf32>
    %456 = vector.extract_strided_slice %431 {offsets = [0, 3], sizes = [8, 1], strides = [1, 1]} : vector<8x8xf32> to vector<8x1xf32>
    %457 = vector.extract_strided_slice %108 {offsets = [24, 13], sizes = [8, 1], strides = [1, 1]} : vector<40x14xf32> to vector<8x1xf32>
    %458 = arith.mulf %456, %457 : vector<8x1xf32>
    %459 = arith.addf %455, %458 : vector<8x1xf32>
    %460 = vector.extract_strided_slice %431 {offsets = [0, 5], sizes = [8, 1], strides = [1, 1]} : vector<8x8xf32> to vector<8x1xf32>
    %461 = arith.mulf %459, %460 : vector<8x1xf32>
    %462 = arith.addf %448, %461 : vector<8x1xf32>
    %463 = vector.extract_strided_slice %431 {offsets = [0, 2], sizes = [8, 1], strides = [1, 1]} : vector<8x8xf32> to vector<8x1xf32>
    %464 = vector.extract_strided_slice %407 {offsets = [0, 2], sizes = [8, 1], strides = [1, 1]} : vector<8x4xf32> to vector<8x1xf32>
    %465 = arith.mulf %463, %464 : vector<8x1xf32>
    %466 = vector.extract_strided_slice %431 {offsets = [0, 3], sizes = [8, 1], strides = [1, 1]} : vector<8x8xf32> to vector<8x1xf32>
    %467 = vector.extract_strided_slice %108 {offsets = [32, 13], sizes = [8, 1], strides = [1, 1]} : vector<40x14xf32> to vector<8x1xf32>
    %468 = arith.mulf %466, %467 : vector<8x1xf32>
    %469 = arith.addf %465, %468 : vector<8x1xf32>
    %470 = vector.extract_strided_slice %431 {offsets = [0, 6], sizes = [8, 1], strides = [1, 1]} : vector<8x8xf32> to vector<8x1xf32>
    %471 = arith.mulf %469, %470 : vector<8x1xf32>
    %472 = arith.addf %462, %471 : vector<8x1xf32>
    %473 = vector.extract_strided_slice %431 {offsets = [0, 3], sizes = [8, 1], strides = [1, 1]} : vector<8x8xf32> to vector<8x1xf32>
    %474 = vector.extract_strided_slice %407 {offsets = [0, 3], sizes = [8, 1], strides = [1, 1]} : vector<8x4xf32> to vector<8x1xf32>
    %475 = arith.mulf %473, %474 : vector<8x1xf32>
    %476 = vector.extract_strided_slice %431 {offsets = [0, 7], sizes = [8, 1], strides = [1, 1]} : vector<8x8xf32> to vector<8x1xf32>
    %477 = arith.mulf %475, %476 : vector<8x1xf32>
    %478 = arith.addf %472, %477 : vector<8x1xf32>
    %cst_47 = arith.constant 2.000000e+00 : f32
    %479 = vector.broadcast %cst_47 : f32 to vector<8x1xf32>
    %480 = arith.mulf %479, %478 : vector<8x1xf32>
    %481 = vector.extract_strided_slice %411 {offsets = [0, 0], sizes = [8, 1], strides = [1, 1]} : vector<8x4xf32> to vector<8x1xf32>
    %482 = arith.mulf %127, %481 : vector<8x1xf32>
    %483 = vector.extract_strided_slice %414 {offsets = [0, 0], sizes = [8, 1], strides = [1, 1]} : vector<8x6xf32> to vector<8x1xf32>
    %484 = arith.mulf %128, %483 : vector<8x1xf32>
    %485 = arith.addf %482, %484 : vector<8x1xf32>
    %486 = vector.extract_strided_slice %414 {offsets = [0, 1], sizes = [8, 1], strides = [1, 1]} : vector<8x6xf32> to vector<8x1xf32>
    %487 = arith.mulf %129, %486 : vector<8x1xf32>
    %488 = arith.addf %485, %487 : vector<8x1xf32>
    %489 = vector.extract_strided_slice %414 {offsets = [0, 3], sizes = [8, 1], strides = [1, 1]} : vector<8x6xf32> to vector<8x1xf32>
    %490 = arith.mulf %130, %489 : vector<8x1xf32>
    %491 = arith.addf %488, %490 : vector<8x1xf32>
    %492 = vector.extract_strided_slice %411 {offsets = [0, 1], sizes = [8, 1], strides = [1, 1]} : vector<8x4xf32> to vector<8x1xf32>
    %493 = arith.mulf %128, %492 : vector<8x1xf32>
    %494 = vector.extract_strided_slice %414 {offsets = [0, 2], sizes = [8, 1], strides = [1, 1]} : vector<8x6xf32> to vector<8x1xf32>
    %495 = arith.mulf %129, %494 : vector<8x1xf32>
    %496 = arith.addf %493, %495 : vector<8x1xf32>
    %497 = vector.extract_strided_slice %414 {offsets = [0, 4], sizes = [8, 1], strides = [1, 1]} : vector<8x6xf32> to vector<8x1xf32>
    %498 = arith.mulf %130, %497 : vector<8x1xf32>
    %499 = arith.addf %496, %498 : vector<8x1xf32>
    %500 = vector.extract_strided_slice %411 {offsets = [0, 2], sizes = [8, 1], strides = [1, 1]} : vector<8x4xf32> to vector<8x1xf32>
    %501 = arith.mulf %129, %500 : vector<8x1xf32>
    %502 = vector.extract_strided_slice %414 {offsets = [0, 5], sizes = [8, 1], strides = [1, 1]} : vector<8x6xf32> to vector<8x1xf32>
    %503 = arith.mulf %130, %502 : vector<8x1xf32>
    %504 = arith.addf %501, %503 : vector<8x1xf32>
    %505 = vector.extract_strided_slice %411 {offsets = [0, 3], sizes = [8, 1], strides = [1, 1]} : vector<8x4xf32> to vector<8x1xf32>
    %506 = arith.mulf %130, %505 : vector<8x1xf32>
    %507 = vector.extract_strided_slice %123 {offsets = [0, 0], sizes = [8, 1], strides = [1, 1]} : vector<8x4xf32> to vector<8x1xf32>
    %508 = arith.mulf %507, %491 : vector<8x1xf32>
    %509 = vector.extract_strided_slice %411 {offsets = [0, 0], sizes = [8, 1], strides = [1, 1]} : vector<8x4xf32> to vector<8x1xf32>
    %510 = arith.mulf %509, %141 : vector<8x1xf32>
    %511 = arith.addf %508, %510 : vector<8x1xf32>
    %512 = vector.extract_strided_slice %3 {offsets = [0, 0], sizes = [8, 1], strides = [1, 1]} : vector<8x4xf32> to vector<8x1xf32>
    %cst_48 = arith.constant 5.000000e-01 : f32
    %513 = vector.broadcast %cst_48 : f32 to vector<8x1xf32>
    %514 = arith.mulf %513, %252 : vector<8x1xf32>
    %515 = arith.subf %511, %514 : vector<8x1xf32>
    %516 = arith.subf %512, %515 : vector<8x1xf32>
    %517 = vector.extract_strided_slice %112 {offsets = [0, 0], sizes = [8, 1], strides = [1, 1]} : vector<8x4xf32> to vector<8x1xf32>
    %518 = arith.subf %516, %517 : vector<8x1xf32>
    %519 = vector.extract_strided_slice %123 {offsets = [0, 0], sizes = [8, 1], strides = [1, 1]} : vector<8x4xf32> to vector<8x1xf32>
    %520 = vector.extract_strided_slice %123 {offsets = [0, 0], sizes = [8, 1], strides = [1, 1]} : vector<8x4xf32> to vector<8x1xf32>
    %521 = arith.mulf %519, %520 : vector<8x1xf32>
    %cst_49 = arith.constant 9.99999971E-10 : f32
    %522 = vector.broadcast %cst_49 : f32 to vector<8x1xf32>
    %523 = arith.addf %521, %522 : vector<8x1xf32>
    %524 = vector.extract_strided_slice %114 {offsets = [0, 0], sizes = [8, 1], strides = [1, 1]} : vector<8x6xf32> to vector<8x1xf32>
    %525 = arith.mulf %524, %491 : vector<8x1xf32>
    %526 = vector.extract_strided_slice %414 {offsets = [0, 0], sizes = [8, 1], strides = [1, 1]} : vector<8x6xf32> to vector<8x1xf32>
    %527 = arith.mulf %526, %141 : vector<8x1xf32>
    %528 = arith.addf %525, %527 : vector<8x1xf32>
    %529 = vector.extract_strided_slice %123 {offsets = [0, 1], sizes = [8, 1], strides = [1, 1]} : vector<8x4xf32> to vector<8x1xf32>
    %530 = arith.mulf %529, %499 : vector<8x1xf32>
    %531 = arith.addf %528, %530 : vector<8x1xf32>
    %532 = vector.extract_strided_slice %411 {offsets = [0, 1], sizes = [8, 1], strides = [1, 1]} : vector<8x4xf32> to vector<8x1xf32>
    %533 = arith.mulf %532, %149 : vector<8x1xf32>
    %534 = arith.addf %531, %533 : vector<8x1xf32>
    %535 = vector.extract_strided_slice %3 {offsets = [0, 1], sizes = [8, 1], strides = [1, 1]} : vector<8x4xf32> to vector<8x1xf32>
    %cst_50 = arith.constant 5.000000e-01 : f32
    %536 = vector.broadcast %cst_50 : f32 to vector<8x1xf32>
    %537 = arith.mulf %536, %328 : vector<8x1xf32>
    %538 = arith.subf %534, %537 : vector<8x1xf32>
    %539 = arith.subf %535, %538 : vector<8x1xf32>
    %540 = vector.extract_strided_slice %112 {offsets = [0, 1], sizes = [8, 1], strides = [1, 1]} : vector<8x4xf32> to vector<8x1xf32>
    %541 = arith.subf %539, %540 : vector<8x1xf32>
    %542 = vector.extract_strided_slice %114 {offsets = [0, 0], sizes = [8, 1], strides = [1, 1]} : vector<8x6xf32> to vector<8x1xf32>
    %543 = vector.extract_strided_slice %123 {offsets = [0, 0], sizes = [8, 1], strides = [1, 1]} : vector<8x4xf32> to vector<8x1xf32>
    %544 = arith.mulf %542, %543 : vector<8x1xf32>
    %545 = vector.extract_strided_slice %114 {offsets = [0, 0], sizes = [8, 1], strides = [1, 1]} : vector<8x6xf32> to vector<8x1xf32>
    %546 = vector.extract_strided_slice %114 {offsets = [0, 0], sizes = [8, 1], strides = [1, 1]} : vector<8x6xf32> to vector<8x1xf32>
    %547 = arith.mulf %545, %546 : vector<8x1xf32>
    %548 = vector.extract_strided_slice %123 {offsets = [0, 1], sizes = [8, 1], strides = [1, 1]} : vector<8x4xf32> to vector<8x1xf32>
    %549 = vector.extract_strided_slice %123 {offsets = [0, 1], sizes = [8, 1], strides = [1, 1]} : vector<8x4xf32> to vector<8x1xf32>
    %550 = arith.mulf %548, %549 : vector<8x1xf32>
    %551 = arith.addf %547, %550 : vector<8x1xf32>
    %cst_51 = arith.constant 9.99999971E-10 : f32
    %552 = vector.broadcast %cst_51 : f32 to vector<8x1xf32>
    %553 = arith.addf %551, %552 : vector<8x1xf32>
    %554 = vector.extract_strided_slice %114 {offsets = [0, 1], sizes = [8, 1], strides = [1, 1]} : vector<8x6xf32> to vector<8x1xf32>
    %555 = arith.mulf %554, %491 : vector<8x1xf32>
    %556 = vector.extract_strided_slice %414 {offsets = [0, 1], sizes = [8, 1], strides = [1, 1]} : vector<8x6xf32> to vector<8x1xf32>
    %557 = arith.mulf %556, %141 : vector<8x1xf32>
    %558 = arith.addf %555, %557 : vector<8x1xf32>
    %559 = vector.extract_strided_slice %114 {offsets = [0, 2], sizes = [8, 1], strides = [1, 1]} : vector<8x6xf32> to vector<8x1xf32>
    %560 = arith.mulf %559, %499 : vector<8x1xf32>
    %561 = arith.addf %558, %560 : vector<8x1xf32>
    %562 = vector.extract_strided_slice %414 {offsets = [0, 2], sizes = [8, 1], strides = [1, 1]} : vector<8x6xf32> to vector<8x1xf32>
    %563 = arith.mulf %562, %149 : vector<8x1xf32>
    %564 = arith.addf %561, %563 : vector<8x1xf32>
    %565 = vector.extract_strided_slice %123 {offsets = [0, 2], sizes = [8, 1], strides = [1, 1]} : vector<8x4xf32> to vector<8x1xf32>
    %566 = arith.mulf %565, %504 : vector<8x1xf32>
    %567 = arith.addf %564, %566 : vector<8x1xf32>
    %568 = vector.extract_strided_slice %411 {offsets = [0, 2], sizes = [8, 1], strides = [1, 1]} : vector<8x4xf32> to vector<8x1xf32>
    %569 = arith.mulf %568, %154 : vector<8x1xf32>
    %570 = arith.addf %567, %569 : vector<8x1xf32>
    %571 = vector.extract_strided_slice %3 {offsets = [0, 2], sizes = [8, 1], strides = [1, 1]} : vector<8x4xf32> to vector<8x1xf32>
    %cst_52 = arith.constant 5.000000e-01 : f32
    %572 = vector.broadcast %cst_52 : f32 to vector<8x1xf32>
    %573 = arith.mulf %572, %404 : vector<8x1xf32>
    %574 = arith.subf %570, %573 : vector<8x1xf32>
    %575 = arith.subf %571, %574 : vector<8x1xf32>
    %576 = vector.extract_strided_slice %112 {offsets = [0, 2], sizes = [8, 1], strides = [1, 1]} : vector<8x4xf32> to vector<8x1xf32>
    %577 = arith.subf %575, %576 : vector<8x1xf32>
    %578 = vector.extract_strided_slice %114 {offsets = [0, 1], sizes = [8, 1], strides = [1, 1]} : vector<8x6xf32> to vector<8x1xf32>
    %579 = vector.extract_strided_slice %123 {offsets = [0, 0], sizes = [8, 1], strides = [1, 1]} : vector<8x4xf32> to vector<8x1xf32>
    %580 = arith.mulf %578, %579 : vector<8x1xf32>
    %581 = vector.extract_strided_slice %114 {offsets = [0, 1], sizes = [8, 1], strides = [1, 1]} : vector<8x6xf32> to vector<8x1xf32>
    %582 = vector.extract_strided_slice %114 {offsets = [0, 0], sizes = [8, 1], strides = [1, 1]} : vector<8x6xf32> to vector<8x1xf32>
    %583 = arith.mulf %581, %582 : vector<8x1xf32>
    %584 = vector.extract_strided_slice %114 {offsets = [0, 2], sizes = [8, 1], strides = [1, 1]} : vector<8x6xf32> to vector<8x1xf32>
    %585 = vector.extract_strided_slice %123 {offsets = [0, 1], sizes = [8, 1], strides = [1, 1]} : vector<8x4xf32> to vector<8x1xf32>
    %586 = arith.mulf %584, %585 : vector<8x1xf32>
    %587 = arith.addf %583, %586 : vector<8x1xf32>
    %588 = vector.extract_strided_slice %114 {offsets = [0, 1], sizes = [8, 1], strides = [1, 1]} : vector<8x6xf32> to vector<8x1xf32>
    %589 = vector.extract_strided_slice %114 {offsets = [0, 1], sizes = [8, 1], strides = [1, 1]} : vector<8x6xf32> to vector<8x1xf32>
    %590 = arith.mulf %588, %589 : vector<8x1xf32>
    %591 = vector.extract_strided_slice %114 {offsets = [0, 2], sizes = [8, 1], strides = [1, 1]} : vector<8x6xf32> to vector<8x1xf32>
    %592 = vector.extract_strided_slice %114 {offsets = [0, 2], sizes = [8, 1], strides = [1, 1]} : vector<8x6xf32> to vector<8x1xf32>
    %593 = arith.mulf %591, %592 : vector<8x1xf32>
    %594 = arith.addf %590, %593 : vector<8x1xf32>
    %595 = vector.extract_strided_slice %123 {offsets = [0, 2], sizes = [8, 1], strides = [1, 1]} : vector<8x4xf32> to vector<8x1xf32>
    %596 = vector.extract_strided_slice %123 {offsets = [0, 2], sizes = [8, 1], strides = [1, 1]} : vector<8x4xf32> to vector<8x1xf32>
    %597 = arith.mulf %595, %596 : vector<8x1xf32>
    %598 = arith.addf %594, %597 : vector<8x1xf32>
    %cst_53 = arith.constant 9.99999971E-10 : f32
    %599 = vector.broadcast %cst_53 : f32 to vector<8x1xf32>
    %600 = arith.addf %598, %599 : vector<8x1xf32>
    %601 = vector.extract_strided_slice %114 {offsets = [0, 3], sizes = [8, 1], strides = [1, 1]} : vector<8x6xf32> to vector<8x1xf32>
    %602 = arith.mulf %601, %491 : vector<8x1xf32>
    %603 = vector.extract_strided_slice %414 {offsets = [0, 3], sizes = [8, 1], strides = [1, 1]} : vector<8x6xf32> to vector<8x1xf32>
    %604 = arith.mulf %603, %141 : vector<8x1xf32>
    %605 = arith.addf %602, %604 : vector<8x1xf32>
    %606 = vector.extract_strided_slice %114 {offsets = [0, 4], sizes = [8, 1], strides = [1, 1]} : vector<8x6xf32> to vector<8x1xf32>
    %607 = arith.mulf %606, %499 : vector<8x1xf32>
    %608 = arith.addf %605, %607 : vector<8x1xf32>
    %609 = vector.extract_strided_slice %414 {offsets = [0, 4], sizes = [8, 1], strides = [1, 1]} : vector<8x6xf32> to vector<8x1xf32>
    %610 = arith.mulf %609, %149 : vector<8x1xf32>
    %611 = arith.addf %608, %610 : vector<8x1xf32>
    %612 = vector.extract_strided_slice %114 {offsets = [0, 5], sizes = [8, 1], strides = [1, 1]} : vector<8x6xf32> to vector<8x1xf32>
    %613 = arith.mulf %612, %504 : vector<8x1xf32>
    %614 = arith.addf %611, %613 : vector<8x1xf32>
    %615 = vector.extract_strided_slice %414 {offsets = [0, 5], sizes = [8, 1], strides = [1, 1]} : vector<8x6xf32> to vector<8x1xf32>
    %616 = arith.mulf %615, %154 : vector<8x1xf32>
    %617 = arith.addf %614, %616 : vector<8x1xf32>
    %618 = vector.extract_strided_slice %123 {offsets = [0, 3], sizes = [8, 1], strides = [1, 1]} : vector<8x4xf32> to vector<8x1xf32>
    %619 = arith.mulf %618, %506 : vector<8x1xf32>
    %620 = arith.addf %617, %619 : vector<8x1xf32>
    %621 = vector.extract_strided_slice %411 {offsets = [0, 3], sizes = [8, 1], strides = [1, 1]} : vector<8x4xf32> to vector<8x1xf32>
    %622 = arith.mulf %621, %156 : vector<8x1xf32>
    %623 = arith.addf %620, %622 : vector<8x1xf32>
    %624 = vector.extract_strided_slice %3 {offsets = [0, 3], sizes = [8, 1], strides = [1, 1]} : vector<8x4xf32> to vector<8x1xf32>
    %cst_54 = arith.constant 5.000000e-01 : f32
    %625 = vector.broadcast %cst_54 : f32 to vector<8x1xf32>
    %626 = arith.mulf %625, %480 : vector<8x1xf32>
    %627 = arith.subf %623, %626 : vector<8x1xf32>
    %628 = arith.subf %624, %627 : vector<8x1xf32>
    %629 = vector.extract_strided_slice %112 {offsets = [0, 3], sizes = [8, 1], strides = [1, 1]} : vector<8x4xf32> to vector<8x1xf32>
    %630 = arith.subf %628, %629 : vector<8x1xf32>
    %631 = vector.extract_strided_slice %114 {offsets = [0, 3], sizes = [8, 1], strides = [1, 1]} : vector<8x6xf32> to vector<8x1xf32>
    %632 = vector.extract_strided_slice %123 {offsets = [0, 0], sizes = [8, 1], strides = [1, 1]} : vector<8x4xf32> to vector<8x1xf32>
    %633 = arith.mulf %631, %632 : vector<8x1xf32>
    %634 = vector.extract_strided_slice %114 {offsets = [0, 3], sizes = [8, 1], strides = [1, 1]} : vector<8x6xf32> to vector<8x1xf32>
    %635 = vector.extract_strided_slice %114 {offsets = [0, 0], sizes = [8, 1], strides = [1, 1]} : vector<8x6xf32> to vector<8x1xf32>
    %636 = arith.mulf %634, %635 : vector<8x1xf32>
    %637 = vector.extract_strided_slice %114 {offsets = [0, 4], sizes = [8, 1], strides = [1, 1]} : vector<8x6xf32> to vector<8x1xf32>
    %638 = vector.extract_strided_slice %123 {offsets = [0, 1], sizes = [8, 1], strides = [1, 1]} : vector<8x4xf32> to vector<8x1xf32>
    %639 = arith.mulf %637, %638 : vector<8x1xf32>
    %640 = arith.addf %636, %639 : vector<8x1xf32>
    %641 = vector.extract_strided_slice %114 {offsets = [0, 3], sizes = [8, 1], strides = [1, 1]} : vector<8x6xf32> to vector<8x1xf32>
    %642 = vector.extract_strided_slice %114 {offsets = [0, 1], sizes = [8, 1], strides = [1, 1]} : vector<8x6xf32> to vector<8x1xf32>
    %643 = arith.mulf %641, %642 : vector<8x1xf32>
    %644 = vector.extract_strided_slice %114 {offsets = [0, 4], sizes = [8, 1], strides = [1, 1]} : vector<8x6xf32> to vector<8x1xf32>
    %645 = vector.extract_strided_slice %114 {offsets = [0, 2], sizes = [8, 1], strides = [1, 1]} : vector<8x6xf32> to vector<8x1xf32>
    %646 = arith.mulf %644, %645 : vector<8x1xf32>
    %647 = arith.addf %643, %646 : vector<8x1xf32>
    %648 = vector.extract_strided_slice %114 {offsets = [0, 5], sizes = [8, 1], strides = [1, 1]} : vector<8x6xf32> to vector<8x1xf32>
    %649 = vector.extract_strided_slice %123 {offsets = [0, 2], sizes = [8, 1], strides = [1, 1]} : vector<8x4xf32> to vector<8x1xf32>
    %650 = arith.mulf %648, %649 : vector<8x1xf32>
    %651 = arith.addf %647, %650 : vector<8x1xf32>
    %652 = vector.extract_strided_slice %114 {offsets = [0, 3], sizes = [8, 1], strides = [1, 1]} : vector<8x6xf32> to vector<8x1xf32>
    %653 = vector.extract_strided_slice %114 {offsets = [0, 3], sizes = [8, 1], strides = [1, 1]} : vector<8x6xf32> to vector<8x1xf32>
    %654 = arith.mulf %652, %653 : vector<8x1xf32>
    %655 = vector.extract_strided_slice %114 {offsets = [0, 4], sizes = [8, 1], strides = [1, 1]} : vector<8x6xf32> to vector<8x1xf32>
    %656 = vector.extract_strided_slice %114 {offsets = [0, 4], sizes = [8, 1], strides = [1, 1]} : vector<8x6xf32> to vector<8x1xf32>
    %657 = arith.mulf %655, %656 : vector<8x1xf32>
    %658 = arith.addf %654, %657 : vector<8x1xf32>
    %659 = vector.extract_strided_slice %114 {offsets = [0, 5], sizes = [8, 1], strides = [1, 1]} : vector<8x6xf32> to vector<8x1xf32>
    %660 = vector.extract_strided_slice %114 {offsets = [0, 5], sizes = [8, 1], strides = [1, 1]} : vector<8x6xf32> to vector<8x1xf32>
    %661 = arith.mulf %659, %660 : vector<8x1xf32>
    %662 = arith.addf %658, %661 : vector<8x1xf32>
    %663 = vector.extract_strided_slice %123 {offsets = [0, 3], sizes = [8, 1], strides = [1, 1]} : vector<8x4xf32> to vector<8x1xf32>
    %664 = vector.extract_strided_slice %123 {offsets = [0, 3], sizes = [8, 1], strides = [1, 1]} : vector<8x4xf32> to vector<8x1xf32>
    %665 = arith.mulf %663, %664 : vector<8x1xf32>
    %666 = arith.addf %662, %665 : vector<8x1xf32>
    %cst_55 = arith.constant 9.99999971E-10 : f32
    %667 = vector.broadcast %cst_55 : f32 to vector<8x1xf32>
    %668 = arith.addf %666, %667 : vector<8x1xf32>
    %669 = math.rsqrt %523 : vector<8x1xf32>
    %670 = arith.mulf %544, %669 : vector<8x1xf32>
    %671 = arith.mulf %580, %669 : vector<8x1xf32>
    %672 = arith.mulf %633, %669 : vector<8x1xf32>
    %673 = arith.mulf %670, %670 : vector<8x1xf32>
    %674 = arith.subf %553, %673 : vector<8x1xf32>
    %675 = math.rsqrt %674 : vector<8x1xf32>
    %676 = arith.mulf %671, %670 : vector<8x1xf32>
    %677 = arith.subf %587, %676 : vector<8x1xf32>
    %678 = arith.mulf %677, %675 : vector<8x1xf32>
    %679 = arith.mulf %672, %670 : vector<8x1xf32>
    %680 = arith.subf %640, %679 : vector<8x1xf32>
    %681 = arith.mulf %680, %675 : vector<8x1xf32>
    %682 = arith.mulf %671, %671 : vector<8x1xf32>
    %683 = arith.subf %600, %682 : vector<8x1xf32>
    %684 = arith.mulf %678, %678 : vector<8x1xf32>
    %685 = arith.subf %683, %684 : vector<8x1xf32>
    %686 = math.rsqrt %685 : vector<8x1xf32>
    %687 = arith.mulf %672, %671 : vector<8x1xf32>
    %688 = arith.subf %651, %687 : vector<8x1xf32>
    %689 = arith.mulf %681, %678 : vector<8x1xf32>
    %690 = arith.subf %688, %689 : vector<8x1xf32>
    %691 = arith.mulf %690, %686 : vector<8x1xf32>
    %692 = arith.mulf %672, %672 : vector<8x1xf32>
    %693 = arith.subf %668, %692 : vector<8x1xf32>
    %694 = arith.mulf %681, %681 : vector<8x1xf32>
    %695 = arith.subf %693, %694 : vector<8x1xf32>
    %696 = arith.mulf %691, %691 : vector<8x1xf32>
    %697 = arith.subf %695, %696 : vector<8x1xf32>
    %698 = math.rsqrt %697 : vector<8x1xf32>
    %699 = arith.mulf %518, %669 : vector<8x1xf32>
    %700 = arith.mulf %670, %699 : vector<8x1xf32>
    %701 = arith.subf %541, %700 : vector<8x1xf32>
    %702 = arith.mulf %701, %675 : vector<8x1xf32>
    %703 = arith.mulf %671, %699 : vector<8x1xf32>
    %704 = arith.subf %577, %703 : vector<8x1xf32>
    %705 = arith.mulf %678, %702 : vector<8x1xf32>
    %706 = arith.subf %704, %705 : vector<8x1xf32>
    %707 = arith.mulf %706, %686 : vector<8x1xf32>
    %708 = arith.mulf %672, %699 : vector<8x1xf32>
    %709 = arith.subf %630, %708 : vector<8x1xf32>
    %710 = arith.mulf %681, %702 : vector<8x1xf32>
    %711 = arith.subf %709, %710 : vector<8x1xf32>
    %712 = arith.mulf %691, %707 : vector<8x1xf32>
    %713 = arith.subf %711, %712 : vector<8x1xf32>
    %714 = arith.mulf %713, %698 : vector<8x1xf32>
    %715 = arith.mulf %714, %698 : vector<8x1xf32>
    %716 = arith.mulf %691, %715 : vector<8x1xf32>
    %717 = arith.subf %707, %716 : vector<8x1xf32>
    %718 = arith.mulf %717, %686 : vector<8x1xf32>
    %719 = arith.mulf %678, %718 : vector<8x1xf32>
    %720 = arith.subf %702, %719 : vector<8x1xf32>
    %721 = arith.mulf %681, %715 : vector<8x1xf32>
    %722 = arith.subf %720, %721 : vector<8x1xf32>
    %723 = arith.mulf %722, %675 : vector<8x1xf32>
    %724 = arith.mulf %670, %723 : vector<8x1xf32>
    %725 = arith.subf %699, %724 : vector<8x1xf32>
    %726 = arith.mulf %671, %718 : vector<8x1xf32>
    %727 = arith.subf %725, %726 : vector<8x1xf32>
    %728 = arith.mulf %672, %715 : vector<8x1xf32>
    %729 = arith.subf %727, %728 : vector<8x1xf32>
    %730 = arith.mulf %729, %669 : vector<8x1xf32>
    %731 = tpu.concatenate %730, %723, %718, %715 in 1 : vector<8x1xf32>, vector<8x1xf32>, vector<8x1xf32>, vector<8x1xf32> -> vector<8x4xf32>
    %c0_56 = arith.constant 0 : index
    %c0_57 = arith.constant 0 : index
    %732 = vector.load %arg4[%c0_56, %c0_57] : memref<8x4xf32, #tpu.memory_space<vmem>>, vector<8x4xf32>
    tpu.vector_store %arg4[%c0_56, %c0_57], %731 {strides = array<i32>} : memref<8x4xf32, #tpu.memory_space<vmem>>, vector<8x4xf32>,
    return
  }
}

</mosaic_0001>

<bundles_post_ra>
// kernel: delan_forward.1
= control target key start
LH: loop header
LB: loop body
LE: loop exit
PB: predicated region body
PF: predicated region fallthrough
CT: control target
= control target key end

     0   :  { %9 = vsyncpa [#allocation3], 0  ;;  %s2619_s0 = inlined_call_operand.vmem [shape: f32[8,12], index: 0, kind: input, shape index: {}]   ;;  %s2620_s1 = inlined_call_operand.hbm [shape: f32[8,32], index: 1, kind: input, shape index: {}]   ;;  %s2621_s2 = inlined_call_operand.hbm [shape: f32[32,46], index: 2, kind: input, shape index: {}]   ;;  %s2622_s3 = inlined_call_operand.vmem [shape: f32[1,78], index: 3, kind: input, shape index: {}]   ;;  %s2623_s4 = inlined_call_operand.vmem [shape: f32[8,4], index: 4, kind: output, shape index: {}]  }
   0x1   :  { %10 = vsyncpa [#allocation5], 0  ;;  %s1859_s15 = smov [#allocation2]   ;;  %s1860_s17 = smov [#allocation4]  }
   0x2   :  { %s19_s16 = sshll.u32 %s1859_s15, 4  ;;  %s28_s18 = sshll.u32 %s1860_s17, 4  ;;  %s20_s16 = int_to_ptr.vmem [resolvable:$true] %s19_s16  ;;  %s1927_s18 = int_to_ptr.vmem [resolvable:$true] %s28_s18 }
   0x3   :  { %s1811_s21 = scalar_lea.hbm %s2620_s1, 128 }
   0x4   :  { %p1812_p0 = scmp.ne.s32.totalorder %s2620_s1, %s1811_s21  ;;  %p1815_p1 = scmp.lt.u32.totalorder %s1811_s21, %s2620_s1 }
   0x6   :  { %p1817_p2 = pnand %p1815_p1, %p1812_p0 }
   0x8   :  { %1820 = shalt.err (!%p1817_p2)
}
   0x9   :  { %s1821_s26 = scalar_lea.vmem %s20_s16, 128  ;;  %p1826_p4 = scmp.lt.s32.totalorder %s20_s16, %s20_s16 }
   0xa   :  { %p1822_p3 = scmp.ne.s32.totalorder %s20_s16, %s1821_s26  ;;  %p1827_p5 = scmp.lt.s32.totalorder %s1821_s26, %s1821_s26 }
   0xc   :  { %p1828_p6 = por %p1827_p5, %p1826_p4 }
   0xe   :  { %p1829_p7 = pnand %p1828_p6, %p1822_p3 }
  0x10   :  { %1832 = shalt.err (!%p1829_p7)
}
  0x11   :  { %22 = dma.hbm_to_vmem [thread:$0]  %s2620_s1, 128, %s20_s16, [#allocation3]  }
  0x12   :  { %s1833_s5 = scalar_lea.hbm %s2621_s2, 512 }
  0x13   :  { %p1834_p8 = scmp.ne.s32.totalorder %s2621_s2, %s1833_s5  ;;  %p1837_p9 = scmp.lt.u32.totalorder %s1833_s5, %s2621_s2 }
  0x15   :  { %p1839_p10 = pnand %p1837_p9, %p1834_p8 }
  0x17   :  { %1842 = shalt.err (!%p1839_p10)
}
  0x18   :  { %s1843_s10 = scalar_lea.vmem %s1927_s18, 512  ;;  %p1848_p12 = scmp.lt.s32.totalorder %s1927_s18, %s1927_s18 }
  0x19   :  { %p1844_p11 = scmp.ne.s32.totalorder %s1927_s18, %s1843_s10  ;;  %p1849_p13 = scmp.lt.s32.totalorder %s1843_s10, %s1843_s10 }
  0x1b   :  { %p1850_p0 = por %p1849_p13, %p1848_p12 }
  0x1d   :  { %p1851_p1 = pnand %p1850_p0, %p1844_p11 }
  0x1f   :  { %1854 = shalt.err (!%p1851_p1)
}
  0x20   :  { %s1861_s1 = smov 128   ;;  %s1862_s11 = smov 8  }
  0x21   :  { %34 = dma.hbm_to_vmem [thread:$0]  %s2621_s2, 512, %s1927_s18, [#allocation5], %s1861_s1, %s1861_s1, %s1862_s11  }
  0x22   :  { %1855 = dma.done.wait [#allocation3], 128  }
  0x23   :  { %1856 = vsyncadd [#allocation3], 4294967168 }
  0x24   :  { %1857 = dma.done.wait [#allocation5], 512  }
  0x25   :  { %1858 = vsyncadd [#allocation5], 4294966784  ;;  %v1863_v0 = vmov 0.0   ;;  %v1963_v1 = vld [vmem:[%s2619_s0] sm:$0xff]  ;;  %v1864_v13 = vmov 683565275  }
  0x26   :  { %1661 = vmatprep.subr.mxu0 %v1863_v0  ;;  %v53_v2 = vand.u32 2139095040, %v1963_v1  ;;  %v50_v4 = vand.u32 2147483647, %v1963_v1  ;;  %v1865_v15 = vmov 2475754826   ;;  %vm52_vm7 = vcmp.lt.s32.totalorder %v1963_v1, 0 }
  0x27   :  { %v1866_v17 = vmov 2131351028   ;;  %v1867_v19 = vmov 2102212464   ;;  %v1868_v21 = vmov 920167782  }
  0x28   :  { %v54_v3 = vshrl.u32 %v53_v2, 23  ;;  %v57_v7 = vand.u32 8388607, %v50_v4  ;;  %v1869_v28 = vmov 1326507024   ;;  %vm1870_vm9 = vmmov 0  }
  0x29   :  { %vm51_vm8 = vcmp.le.f32.partialorder %v50_v4, 0.7853982  ;;  %1663 = vmatprep.mubr.msk.f32.mxu0 %vm1870_vm9, %v1863_v0  ;;  %1674 = vmatprep.mubr.msk.f32.mxu1 %vm1870_vm9, %v1863_v0  ;;  %s1872_s2 = smov 4   ;;  %s1877_s16 = smov 96  }
  0x2a   :  { %v1621_v5 = vadd.s32 4294967169, %v54_v3  ;;  %v58_v10 = vor.u32 8388608, %v57_v7  ;;  %s1880_s19 = smov 124   ;;  %s1881_s20 = smov 125  }
  0x2b   :  { %s1882_s21 = smov 122   ;;  %s1883_s22 = smov 123  }
  0x2c   :  { %v60_v6 = vadd.s32 1, %v1621_v5  ;;  %v98_v30 = vshll.u32 %v58_v10, 8  ;;  %s1886_s23 = smov 126   ;;  %s1887_s24 = smov 127  }
  0x2d   :  { %s1890_s25 = smov 121   ;;  %s1891_s26 = smov 120  }
  0x2e   :  { %vm61_vm0 = vcmp.gt.s32.totalorder %v60_v6, 0  ;;  %s1892_s27 = smov 119   ;;  %s1893_s28 = smov 118  }
  0x2f   :  { %v62_v8 = vsel %vm61_vm0, %v60_v6, 0  ;;  %vm142_vm0 = vweird.f32 %v1963_v1  ;;  %s1894_s29 = smov 117   ;;  %s1895_s30 = smov 3  }
  0x30   :  { %v64_v9 = vand.u32 31, %v62_v8  ;;  %v63_v11 = vshrl.u32 %v62_v8, 5  ;;  %s1897_s7 = smov 1   ;;  %s1898_s8 = smov 9  }
  0x31   :  { %s1899_s9 = smov 7   ;;  %s1900_s10 = smov 2  }
  0x32   :  { %v65_v12 = vsub.s32 32, %v64_v9  ;;  %v67_v14 = vshll.u32 %v1864_v13, %v64_v9  ;;  %v70_v16 = vshll.u32 %v1865_v15, %v64_v9  ;;  %v73_v18 = vshll.u32 %v1866_v17, %v64_v9  ;;  %s1901_s1 = smov 11  }
  0x33   :  { %v76_v20 = vshll.u32 %v1867_v19, %v64_v9  ;;  %v79_v22 = vshll.u32 %v1868_v21, %v64_v9  ;;  %vm82_vm1 = vcmp.lt.s32.totalorder %v63_v11, 1  ;;  %vm85_vm2 = vcmp.lt.s32.totalorder %v63_v11, 4 }
  0x34   :  { %v66_v23 = vshrl.u32 %v1864_v13, %v65_v12  ;;  %v68_v24 = vshrl.u32 %v1865_v15, %v65_v12  ;;  %v71_v25 = vshrl.u32 %v1866_v17, %v65_v12  ;;  %v74_v26 = vshrl.u32 %v1867_v19, %v65_v12 }
  0x35   :  { %v77_v27 = vshrl.u32 %v1868_v21, %v65_v12  ;;  %v80_v29 = vshrl.u32 %v1869_v28, %v65_v12  ;;  %vm83_vm3 = vcmp.lt.s32.totalorder %v63_v11, 2  ;;  %vm84_vm4 = vcmp.lt.s32.totalorder %v63_v11, 3 }
  0x36   :  { %v69_v31 = vor.u32 %v68_v24, %v67_v14  ;;  %v72_v32 = vor.u32 %v71_v25, %v70_v16  ;;  %v75_v33 = vor.u32 %v74_v26, %v73_v18  ;;  %v1871_v25 = vmov 0  }
  0x37   :  { %v78_v34 = vor.u32 %v77_v27, %v76_v20  ;;  %v81_v35 = vor.u32 %v80_v29, %v79_v22  ;;  %1771 = vset.pattern.permute.xlu1 %v1871_v25  ;;  %1773 = vset.pattern.permute.xlu0 %v1871_v25 }
  0x38   :  { %v86_v36 = vsel %vm82_vm1, %v66_v23, %v69_v31  ;;  %v87_v37 = vsel %vm85_vm2, %v75_v33, 2102212464  ;;  %v90_v38 = vsel %vm82_vm1, %v69_v31, %v72_v32  ;;  %v94_v39 = vsel %vm82_vm1, %v72_v32, %v75_v33  ;;  %v1983_v23 = vld [vmem:[#allocation2] sm:$0xff] }
  0x39   :  { %v88_v40 = vsel %vm84_vm4, %v72_v32, %v87_v37  ;;  %v91_v41 = vsel %vm85_vm2, %v78_v34, 920167782  ;;  %v95_v42 = vsel %vm85_vm2, %v81_v35, 1326507024  ;;  %1662 = vmatpush3.msra.mxu0 %v1983_v23  ;;  %vm261_vm1 = vcmask 31744  }
  0x3a   :  { %v92_v43 = vsel %vm84_vm4, %v75_v33, %v91_v41  ;;  %v96_v44 = vsel %vm84_vm4, %v78_v34, %v95_v42  ;;  %v89_v45 = vsel %vm83_vm3, %v86_v36, %v88_v40  ;;  %v1874_v40 = vmov 2   ;;  %v45_v41 = vld [vmem:[#allocation4] sm:$0xff]  ;;  %v46_v42 = vld [vmem:[#allocation4 + $0x8] sm:$0xff] }
  0x3b   :  { %v93_v46 = vsel %vm83_vm3, %v90_v38, %v92_v43  ;;  %v97_v47 = vsel %vm83_vm3, %v94_v39, %v96_v44  ;;  %v105_v52 = vmul.u32 %v98_v30, %v89_v45  ;;  %v1873_v39 = vmov 1  }
  0x3c   :  { %v1969_v48 = vmul.u32.u64.low %v98_v30, %v97_v47  ;;  %v1970_v49 = vmul.u32.u64.high %v98_v30, %v97_v47, %v1969_v48  ;;  %v1972_v50 = vmul.u32.u64.low %v98_v30, %v93_v46  ;;  %v1973_v51 = vmul.u32.u64.high %v98_v30, %v93_v46, %v1972_v50 }
  0x3d   :  { %v1875_v43 = vmov 0.0|0.0   ;;  %v1778_v44 = vpack.i.bf16 %v46_v42, %v45_v41  ;;  %v1713_v45 = vpack.c.bf16 %v46_v42, %v45_v41  ;;  %v1876_v46 = vmov 3  }
  0x3e   :  { %vm107_vm5 = vc.u32 %v1970_v49, %v1972_v50  ;;  %v108_v53 = vadd.s32 1, %v1973_v51  ;;  %v106_v2 = vadd.s32 %v1972_v50, %v1970_v49  ;;  %1712 = vmatprep.subr.bf16.mxu1 %v1875_v43  ;;  %1718 = vmatprep.subr.bf16.mxu0 %v1875_v43  ;;  %vm269_vm2 = vcmask 64512   ;;  %v47_v49 = vld [vmem:[#allocation4 + $0x10] sm:$0xff]  ;;  %v48_v50 = vld [vmem:[#allocation4 + $0x18] sm:$0xff] }
  0x3f   :  { %1714 = vmatpush3.bf16.msra.mxu1 %v1713_v45  ;;  %vm431_vm4 = vcmask 261120  }
  0x40   :  { %v109_v54 = vsel %vm107_vm5, %v108_v53, %v1973_v51  ;;  %1715 = vmatprep.subr.bf16.mxu1 %v1875_v43  ;;  %v1716_v51 = vpack.c.bf16 %v48_v50, %v47_v49  ;;  %v2001_v53 = vld [vmem:[%s2622_s3] ss:$0 sm:$0xff]  ;;  %s1879_s3 = smov 64  }
  0x41   :  { %v110_v55 = vadd.s32 %v109_v54, %v105_v52  ;;  %v1783_v52 = vpack.i.bf16 %v48_v50, %v47_v49 }
  0x43   :  { %v111_v56 = vadd.s32 536870912, %v110_v55  ;;  %1717 = vmatpush3.bf16.msra.mxu1 %v1716_v51 }
  0x45   :  { %v112_v57 = vshrl.u32 %v111_v56, 30 }
  0x47   :  { %v113_v58 = vshll.u32 %v112_v57, 30  ;;  %v136_v15 = vsub.s32 4, %v112_v57 }
  0x49   :  { %v114_v59 = vsub.s32 %v110_v55, %v113_v58  ;;  %v137_v18 = vsel %vm52_vm7, %v136_v15, %v112_v57  ;;  %v354_v55 = vlaneseq }
  0x4a   :  { %v139_v21 = vsel %vm51_vm8, 0, %v137_v18 }
  0x4b   :  { %v116_v60 = vsub.s32 0, %v114_v59  ;;  %v246_v22 = vadd.s32 3, %v139_v21  ;;  %v143_v4 = vand.u32 3, %v139_v21  ;;  %v2004_v56 = vshrl.u32 %v354_v55, 7 }
  0x4d   :  { %v1622_v61 = vmin.u32 %v116_v60, %v114_v59  ;;  %v247_v24 = vand.u32 3, %v246_v22  ;;  %vm148_vm10 = vcmp.eq.s32.totalorder %v143_v4, 2  ;;  %vm145_vm12 = vcmp.eq.s32.totalorder %v143_v4, 0 }
  0x4e   :  { %vm144_vm14 = vcmp.lt.s32.totalorder %v143_v4, 2  ;;  %v366_v58 = vsub.s32 4, %v2004_v56  ;;  %v426_v22 = vsub.s32 7, %v2004_v56  ;;  %v417_v4 = vsub.s32 3, %v2004_v56 }
  0x4f   :  { %v118_v62 = vclz %v1622_v61  ;;  %vm252_vm11 = vcmp.eq.s32.totalorder %v247_v24, 2  ;;  %vm249_vm13 = vcmp.eq.s32.totalorder %v247_v24, 0  ;;  %vm248_vm15 = vcmp.lt.s32.totalorder %v247_v24, 2 }
  0x50   :  { %v386_v61 = vsub.s32 5, %v2004_v56 }
  0x51   :  { %v1623_v63 = vadd.s32 4294967294, %v118_v62 }
  0x53   :  { %vm1624_vm6 = vcmp.lt.s32.totalorder %v1623_v63, 0 }
  0x54   :  { %v121_v3 = vsel %vm1624_vm6, 0, %v1623_v63  ;;  %v367_v63 = vrot.slane %v1983_v23, %v366_v58 }
  0x55   :  { %v122_v5 = vsub.s32 32, %v121_v3  ;;  %v123_v6 = vshll.u32 %v114_v59, %v121_v3  ;;  %v126_v7 = vsub.s32 4294967266, %v121_v3  ;;  %v356_v59 = vsub.s32 0, %v2004_v56 }
  0x56   :  { %v377_v3 = vsub.s32 1, %v2004_v56 }
  0x57   :  { %v124_v8 = vshrl.u32 %v106_v2, %v122_v5  ;;  %v127_v9 = vadd.s32 127, %v126_v7  ;;  %v357_v2 = vrot.slane %v1983_v23, %v356_v59  ;;  %v387_v5 = vrot.slane %v1983_v23, %v386_v61 }
  0x58   :  { %v406_v7 = vsub.s32 6, %v2004_v56 }
  0x59   :  { %v125_v10 = vor.u32 %v124_v8, %v123_v6  ;;  %v128_v11 = vshll.u32 %v127_v9, 23  ;;  %v397_v6 = vsub.s32 2, %v2004_v56 }
  0x5a   :  { %v407_v18 = vrot.slane %v1983_v23, %v406_v7 }
  0x5b   :  { %v129_v12 = vor.u32 4788187, %v128_v11  ;;  %v132_v13 = vcvt.s32.f32 %v125_v10  ;;  %v378_v11 = vrot.slane %v1983_v23, %v377_v3 }
  0x5d   :  { %v130_v14 = vand.u32 2147483647, %v129_v12 }
  0x5f   :  { %v133_v16 = vmul.f32 %v132_v13, %v130_v14 }
  0x61   :  { %v134_v17 = vxor.u32 2147483648, %v133_v16 }
  0x63   :  { %v135_v19 = vsel %vm52_vm7, %v134_v17, %v133_v16  ;;  %v398_v17 = vrot.slane %v1983_v23, %v397_v6 }
  0x64   :  { %v138_v20 = vsel %vm51_vm8, %v1963_v1, %v135_v19 }
  0x65   :  { %1792 = vcosq.f32 %v138_v20 }
  0x66   :  { %1794 = vsinq.f32 %v138_v20 }
  0x6f   :  { %v1793_v26 = vpop.eup %1792 }
  0x70   :  { %v1795_v27 = vpop.eup %1794  ;;  %v149_v28 = vxor.u32 2147483648, %v1793_v26 }
  0x71   :  { %v146_v29 = vxor.u32 2147483648, %v1795_v27 }
  0x72   :  { %v254_v30 = vsel %vm252_vm11, %v149_v28, %v1795_v27  ;;  %v150_v31 = vsel %vm148_vm10, %v149_v28, %v1795_v27  ;;  %vm738_vm10 = vcmask 48128   ;;  %vm740_vm11 = vcmask 56320  }
  0x73   :  { %v251_v32 = vsel %vm249_vm13, %v1793_v26, %v146_v29  ;;  %v147_v33 = vsel %vm145_vm12, %v1793_v26, %v146_v29  ;;  %v1878_v29 = vmov -0.01  }
  0x74   :  { %v255_v34 = vsel %vm248_vm15, %v251_v32, %v254_v30  ;;  %v151_v35 = vsel %vm144_vm14, %v147_v33, %v150_v31  ;;  %v427_v32 = vrot.slane %v1983_v23, %v426_v22  ;;  %v418_v33 = vrot.slane %v1983_v23, %v417_v4 }
  0x75   :  { %v256_v36 = vsel %vm142_vm0, nan, %v255_v34  ;;  %v152_v37 = vsel %vm142_vm0, nan, %v151_v35  ;;  %vm1608_vm14 = vcmask 7168   ;;  %vm1610_vm15 = vcmask 15360  }
  0x76   :  { %258 = vrot.lane.b32.xlu0 %v256_v36, %s1872_s2  ;;  %v348_v38 = vsub.f32 0.0, %v256_v36  ;;  %361 = vperm.xlu1 %1771, %v152_v37   ;;  %vm1612_vm0 = vcmask 23552  }
  0x7a   :  { %1772 = vset.pattern.permute.xlu1 %v1873_v39  ;;  %351 = vperm.xlu0 %1773, %v348_v38  }
  0x7b   :  { %381 = vperm.xlu1 %1772, %v152_v37  }
  0x7e   :  { %1774 = vset.pattern.permute.xlu0 %v1874_v40 }
  0x7f   :  { %372 = vperm.xlu1 %1772, %v348_v38   ;;  %392 = vperm.xlu0 %1774, %v348_v38  }
  0x83   :  { %1775 = vset.pattern.permute.xlu1 %v1874_v40  ;;  %1777 = vset.pattern.permute.xlu0 %v1876_v46 }
  0x84   :  { %401 = vperm.xlu1 %1775, %v152_v37   ;;  %421 = vperm.xlu0 %1777, %v152_v37  }
  0x88   :  { %1776 = vset.pattern.permute.xlu1 %v1876_v46  ;;  %1784 = vrot.lane.b32.xlu0 %v1783_v52, %s1877_s16 }
  0x89   :  { %412 = vperm.xlu1 %1776, %v348_v38  }
  0x8d   :  { %1779 = vrot.lane.b32.xlu1 %v1778_v44, %s1877_s16 }
  0x91   :  { %537 = vrot.lane.b32.xlu1 %v2001_v53, %s1877_s16 }
  0x95   :  { %671 = vrot.lane.b32.xlu1 %v2001_v53, %s1879_s3 }
  0xe8   :  { %v259_v47 = vpop.permute.xlu0 %258 }
  0xe9   :  { %v262_v48 = vsel %vm261_vm1, %v152_v37, %v259_v47 }
  0xea   :  { %1664 = vmatmul.mubr.msk.f32.vlgmr.msra.gmra.mrb[0].mxu0 %vm269_vm2, %v262_v48 }
  0xeb   :  { %1697 = vmatprep.mubr.msk.f32.mxu0 %vm1870_vm9, %v1863_v0 }
  0xf5   :  { %v362_v54 = vpop.permute.xlu1 %361 }
  0xf6   :  { %v368_v8 = vmul.f32 %v367_v63, %v362_v54 }
  0xf9   :  { %v352_v62 = vpop.permute.xlu0 %351 }
  0xfa   :  { %v382_v57 = vpop.permute.xlu1 %381  ;;  %v358_v9 = vmul.f32 %v357_v2, %v352_v62 }
  0xfb   :  { %v388_v16 = vmul.f32 %v387_v5, %v382_v57 }
  0xfc   :  { %v369_v19 = vadd.f32 %v368_v8, %v358_v9 }
  0xfe   :  { %v373_v60 = vpop.permute.xlu1 %372  ;;  %v393_v12 = vpop.permute.xlu0 %392 }
  0xff   :  { %v379_v21 = vmul.f32 %v378_v11, %v373_v60  ;;  %v399_v27 = vmul.f32 %v398_v17, %v393_v12 }
 0x101   :  { %v389_v31 = vadd.f32 %v388_v16, %v379_v21 }
 0x103   :  { %v402_v10 = vpop.permute.xlu1 %401  ;;  %v422_v26 = vpop.permute.xlu0 %421 }
 0x104   :  { %v408_v28 = vmul.f32 %v407_v18, %v402_v10  ;;  %v428_v42 = vmul.f32 %v427_v32, %v422_v26  ;;  %v1885_v26 = vmov 5  }
 0x105   :  { %1789 = vset.pattern.permute.xlu1 %v1885_v26 }
 0x106   :  { %v409_v39 = vadd.f32 %v408_v28, %v399_v27 }
 0x107   :  { %v1785_v38 = vpop.permute.xlu0 %1784 }
 0x108   :  { %v413_v24 = vpop.permute.xlu1 %412  ;;  %v1787_v40 = vunpack.i.h.bf16 %v1785_v38  ;;  %v1786_v41 = vunpack.i.l.bf16 %v1785_v38 }
 0x109   :  { %v419_v44 = vmul.f32 %v418_v33, %v413_v24 }
 0x10a   :  { %v1722_v23 = vpack.c.bf16 %v1787_v40, %v1786_v41 }
 0x10b   :  { %v429_v47 = vadd.f32 %v428_v42, %v419_v44 }
 0x10c   :  { %v1780_v35 = vpop.permute.xlu1 %1779 }
 0x10d   :  { %v1782_v36 = vunpack.i.h.bf16 %v1780_v35  ;;  %v1781_v37 = vunpack.i.l.bf16 %v1780_v35 }
 0x10f   :  { %v1719_v46 = vpack.c.bf16 %v1782_v36, %v1781_v37 }
 0x110   :  { %v538_v50 = vpop.permute.xlu1 %537 }
 0x111   :  { %1720 = vmatpush3.bf16.msra.mxu0 %v1719_v46 }
 0x112   :  { %1721 = vmatprep.subr.bf16.mxu0 %v1875_v43 }
 0x115   :  { %1723 = vmatpush3.bf16.msra.mxu0 %v1722_v23  ;;  %v1888_v23 = vmov 7  }
 0x1bd   :  { %v339_v13 = vpop.f32.mrb[0].mxu0 }
 0x1be   :  { %v340_v14 = vadd.f32 %v2001_v53, %v339_v13  ;;  %v1665_v15 = vpop.f32.mrb[1].mxu0 }
 0x1c0   :  { %vm343_vm3 = vcmp.gt.f32.partialorder %v340_v14, 0.0  ;;  %v344_v20 = vmul.f32 0.01, %v340_v14 }
 0x1c2   :  { %v345_v25 = vsel %vm343_vm3, %v340_v14, %v344_v20  ;;  %v672_v14 = vpop.permute.xlu1 %671 }
 0x1c3   :  { %vm346_vm5 = vcmp.gt.f32.partialorder %v345_v25, 0.0  ;;  %1675 = vmatmul.mubr.msk.f32.vlgmr.msra.gmra.mrb[0].mxu1 %vm431_vm4, %v345_v25  ;;  %v1884_v25 = vmov 4  }
 0x1c4   :  { %v347_v30 = vsel %vm346_vm5, 1.0, %v1878_v29  ;;  %1677 = vmatprep.mubr.msk.f32.mxu1 %vm1870_vm9, %v1863_v0  ;;  %1788 = vset.pattern.permute.xlu0 %v1884_v25 }
 0x1c5   :  { %v370_v34 = vmul.f32 %v369_v19, %v347_v30  ;;  %v390_v45 = vmul.f32 %v389_v31, %v347_v30  ;;  %v410_v48 = vmul.f32 %v409_v39, %v347_v30  ;;  %v430_v49 = vmul.f32 %v429_v47, %v347_v30 }
 0x1c6   :  { %v1889_v47 = vmov 6  }
 0x1c7   :  { %1678 = vmatmul.mubr.msk.f32.gmra.mrb[2].mxu1 %vm431_vm4, %v370_v34 }
 0x1c8   :  { %1680 = vmatprep.mubr.msk.f32.mxu1 %vm1870_vm9, %v1863_v0 }
 0x1cb   :  { %1681 = vmatmul.mubr.msk.f32.gmra.mrb[4].mxu1 %vm431_vm4, %v390_v45 }
 0x1cc   :  { %1683 = vmatprep.mubr.msk.f32.mxu1 %vm1870_vm9, %v1863_v0 }
 0x1cf   :  { %1684 = vmatmul.mubr.msk.f32.gmra.mrb[6].mxu1 %vm431_vm4, %v410_v48 }
 0x1d0   :  { %1686 = vmatprep.mubr.msk.f32.mxu1 %vm1870_vm9, %v1863_v0 }
 0x1d3   :  { %1687 = vmatmul.mubr.msk.f32.gmra.mrb[8].mxu1 %vm431_vm4, %v430_v49 }
 0x296   :  { %v513_v51 = vpop.f32.mrb[0].mxu1 }
 0x297   :  { %v540_v52 = vadd.f32 %v538_v50, %v513_v51  ;;  %v1676_v54 = vpop.f32.mrb[1].mxu1 }
 0x299   :  { %vm541_vm6 = vcmp.gt.f32.partialorder %v540_v52, 0.0  ;;  %v542_v43 = vmul.f32 0.01, %v540_v52 }
 0x29a   :  { %v518_v55 = vpop.f32.mrb[2].mxu1 }
 0x29b   :  { %v543_v57 = vsel %vm541_vm6, %v540_v52, %v542_v43  ;;  %v1679_v60 = vpop.f32.mrb[3].mxu1 }
 0x29c   :  { %vm544_vm7 = vcmp.gt.f32.partialorder %v543_v57, 0.0  ;;  %1698 = vmatmul.mubr.msk.f32.vlgmr.msra.gmra.mrb[2].mxu0 %vm431_vm4, %v543_v57 }
 0x29d   :  { %v545_v62 = vsel %vm544_vm7, 1.0, %v1878_v29  ;;  %1700 = vmatprep.mubr.msk.f32.mxu0 %vm1870_vm9, %v1863_v0 }
 0x29e   :  { %v546_v63 = vmul.f32 %v545_v62, %v518_v55  ;;  %v523_v2 = vpop.f32.mrb[4].mxu1 }
 0x29f   :  { %v547_v5 = vmul.f32 %v545_v62, %v523_v2  ;;  %v1682_v53 = vpop.f32.mrb[5].mxu1 }
 0x2a0   :  { %1701 = vmatmul.mubr.msk.f32.gmra.mrb[4].mxu0 %vm431_vm4, %v546_v63 }
 0x2a1   :  { %1703 = vmatprep.mubr.msk.f32.mxu0 %vm1870_vm9, %v1863_v0 }
 0x2a2   :  { %v528_v8 = vpop.f32.mrb[6].mxu1 }
 0x2a3   :  { %v548_v9 = vmul.f32 %v545_v62, %v528_v8  ;;  %v1685_v10 = vpop.f32.mrb[7].mxu1 }
 0x2a4   :  { %1704 = vmatmul.mubr.msk.f32.gmra.mrb[6].mxu0 %vm431_vm4, %v547_v5  ;;  %v748_v10 = vand.u32 1, %v2004_v56 }
 0x2a5   :  { %1706 = vmatprep.mubr.msk.f32.mxu0 %vm1870_vm9, %v1863_v0 }
 0x2a6   :  { %v533_v11 = vpop.f32.mrb[8].mxu1  ;;  %vm2148_vm12 = vcmp.eq.s32.totalorder %v748_v10, 0  ;;  %vm2154_vm13 = vcmp.eq.s32.totalorder %v748_v10, 1 }
 0x2a7   :  { %v549_v12 = vmul.f32 %v545_v62, %v533_v11  ;;  %v1688_v13 = vpop.f32.mrb[9].mxu1 }
 0x2a8   :  { %1707 = vmatmul.mubr.msk.f32.gmra.mrb[8].mxu0 %vm431_vm4, %v548_v9 }
 0x2a9   :  { %1709 = vmatprep.mubr.msk.f32.mxu0 %vm1870_vm9, %v1863_v0  ;;  %vm736_vm9 = vcmask 39936  }
 0x2ac   :  { %1710 = vmatmul.mubr.msk.f32.gmra.mrb[10].mxu0 %vm431_vm4, %v549_v12 }
 0x36f   :  { %v647_v15 = vpop.f32.mrb[2].mxu0 }
 0x370   :  { %v2067_v16 = vadd.f32 %v672_v14, %v647_v15  ;;  %v1699_v17 = vpop.f32.mrb[3].mxu0 }
 0x372   :  { %700 = vrot.lane.b32.xlu1 %v2067_v16, %s1880_s19  ;;  %687 = vrot.lane.b32.xlu0 %v2067_v16, %s1881_s20  ;;  %v675_v18 = vmin.f32 %v2067_v16, 20.0  ;;  %vm678_vm8 = vcmp.gt.f32.partialorder %v2067_v16, 20.0 }
 0x373   :  { %v2074_v19 = vpop.f32.mrb[4].mxu0 }
 0x374   :  { %v1702_v0 = vpop.f32.mrb[5].mxu0  ;;  %v676_v20 = vmul.f32 1.442695, %v675_v18 }
 0x376   :  { %722 = vrot.lane.b32.xlu1 %v2067_v16, %s1882_s21  ;;  %713 = vrot.lane.b32.xlu0 %v2067_v16, %s1883_s22  ;;  %1796 = vpow2.f32 %v676_v20 }
 0x377   :  { %v2080_v21 = vpop.f32.mrb[6].mxu0 }
 0x378   :  { %v1705_v24 = vpop.f32.mrb[7].mxu0 }
 0x37b   :  { %v2082_v27 = vpop.f32.mrb[8].mxu0 }
 0x37c   :  { %v1708_v28 = vpop.f32.mrb[9].mxu0 }
 0x37f   :  { %v2084_v29 = vpop.f32.mrb[10].mxu0 }
 0x380   :  { %v1797_v30 = vpop.eup %1796  ;;  %v1711_v31 = vpop.f32.mrb[11].mxu0 }
 0x381   :  { %v679_v32 = vadd.f32 1.0, %v1797_v30 }
 0x383   :  { %1798 = vrcp.f32 %v679_v32 }
 0x384   :  { %1800 = vlog2.f32 %v679_v32 }
 0x38d   :  { %v1799_v33 = vpop.eup %1798 }
 0x38e   :  { %v684_v34 = vmul.f32 %v1799_v33, %v1797_v30  ;;  %v1801_v49 = vpop.eup %1800 }
 0x38f   :  { %v681_v50 = vmul.f32 0.6931472, %v1801_v49 }
 0x390   :  { %v2087_v35 = vmul.f32 %v684_v34, %v2080_v21  ;;  %v2090_v36 = vmul.f32 %v684_v34, %v2084_v29  ;;  %v2093_v37 = vmul.f32 %v684_v34, %v2082_v27  ;;  %v756_v48 = vmul.f32 %v684_v34, %v2074_v19 }
 0x391   :  { %v2127_v51 = vsel %vm678_vm8, %v2067_v16, %v681_v50 }
 0x392   :  { %v2131_v43 = vmul.f32 %v2127_v51, %v1963_v1 }
 0x3e4   :  { %v701_v38 = vpop.permute.xlu1 %700  ;;  %v688_v39 = vpop.permute.xlu0 %687 }
 0x3e5   :  { %v690_v40 = vmul.f32 %v688_v39, %v1963_v1  ;;  %v703_v41 = vmul.f32 %v701_v38, %v1963_v1 }
 0x3e7   :  { %696 = vrot.lane.b32.xlu1 %v690_v40, %s1886_s23  ;;  %692 = vrot.lane.b32.xlu0 %v690_v40, %s1887_s24 }
 0x3e8   :  { %v723_v42 = vpop.permute.xlu1 %722  ;;  %v714_v44 = vpop.permute.xlu0 %713 }
 0x3e9   :  { %v725_v45 = vmul.f32 %v723_v42, %v1963_v1  ;;  %v716_v46 = vmul.f32 %v714_v44, %v1963_v1 }
 0x3eb   :  { %705 = vrot.lane.b32.xlu1 %v703_v41, %s1881_s20  ;;  %709 = vrot.lane.b32.xlu0 %v703_v41, %s1887_s24 }
 0x3ef   :  { %727 = vrot.lane.b32.xlu1 %v725_v45, %s1887_s24  ;;  %718 = vrot.lane.b32.xlu0 %v716_v46, %s1886_s23 }
 0x3f3   :  { %732 = vrot.lane.b32.xlu0 %v1963_v1, %s1880_s19  ;;  %822 = vrot.lane.b32.xlu1 %v2082_v27, %s1882_s21 }
 0x3f7   :  { %831 = vrot.lane.b32.xlu0 %v2074_v19, %s1882_s21  ;;  %797 = vrot.lane.b32.xlu1 %v2080_v21, %s1882_s21 }
 0x3fb   :  { %758 = vperm.xlu0 %1788, %v1963_v1   ;;  %865 = vperm.xlu1 %1789, %v1963_v1  }
 0x3ff   :  { %1791 = vset.pattern.permute.xlu0 %v1888_v23  ;;  %1790 = vset.pattern.permute.xlu1 %v1889_v47 }
 0x400   :  { %1059 = vperm.xlu0 %1791, %v1963_v1   ;;  %962 = vperm.xlu1 %1790, %v1963_v1  }
 0x404   :  { %787 = vrot.lane.b32.xlu1 %v2074_v19, %s1890_s25  ;;  %807 = vrot.lane.b32.xlu0 %v2084_v29, %s1883_s22 }
 0x408   :  { %782 = vrot.lane.b32.xlu1 %v756_v48, %s1880_s19 }
 0x40c   :  { %919 = vrot.lane.b32.xlu1 %v2074_v19, %s1891_s26 }
 0x459   :  { %v697_v52 = vpop.permute.xlu1 %696  ;;  %v693_v54 = vpop.permute.xlu0 %692 }
 0x45a   :  { %v695_v55 = vadd.f32 %v693_v54, %v2131_v43 }
 0x45c   :  { %v699_v62 = vadd.f32 %v697_v52, %v695_v55 }
 0x45d   :  { %v706_v57 = vpop.permute.xlu1 %705  ;;  %v710_v60 = vpop.permute.xlu0 %709 }
 0x45e   :  { %v712_v2 = vadd.f32 %v710_v60, %v2131_v43  ;;  %v2135_v53 = vadd.f32 %v706_v57, %v699_v62 }
 0x461   :  { %v719_v63 = vpop.permute.xlu0 %718  ;;  %v728_v5 = vpop.permute.xlu1 %727 }
 0x462   :  { %v2137_v8 = vadd.f32 %v719_v63, %v712_v2  ;;  %v2141_v11 = vadd.f32 %v728_v5, %v2131_v43 }
 0x465   :  { %v733_v9 = vpop.permute.xlu0 %732  ;;  %v823_v24 = vpop.permute.xlu1 %822 }
 0x466   :  { %v735_v12 = vsel %vm261_vm1, %v733_v9, %v2135_v53 }
 0x467   :  { %v737_v13 = vsel %vm736_vm9, %v735_v12, %v2137_v8 }
 0x468   :  { %v739_v14 = vsel %vm738_vm10, %v737_v13, %v2141_v11 }
 0x469   :  { %v741_v15 = vsel %vm740_vm11, %v739_v14, %v2131_v43  ;;  %v798_v34 = vpop.permute.xlu1 %797 }
 0x46a   :  { %v771_v18 = vrot.slane %v741_v15, %v356_v59  ;;  %v779_v20 = vrot.slane %v741_v15, %v366_v58  ;;  %v972_v25 = vrot.slane %v741_v15, %v397_v6  ;;  %v977_v26 = vrot.slane %v741_v15, %v406_v7 }
 0x46b   :  { %v1069_v28 = vrot.slane %v741_v15, %v417_v4  ;;  %v1074_v59 = vrot.slane %v741_v15, %v426_v22  ;;  %v832_v22 = vpop.permute.xlu0 %831  ;;  %v875_v23 = vrot.slane %v741_v15, %v377_v3  ;;  %v880_v55 = vrot.slane %v741_v15, %v386_v61 }
 0x46c   :  { %v772_v30 = vsel %vm2148_vm12, %v771_v18, 0.0  ;;  %v973_v58 = vsel %vm2148_vm12, %v972_v25, 0.0 }
 0x46d   :  { %v780_v31 = vsel %vm2154_vm13, %v779_v20, %v772_v30  ;;  %v1070_v6 = vsel %vm2148_vm12, %v1069_v28, 0.0  ;;  %v2179_v7 = vsel %vm2154_vm13, %v977_v26, %v973_v58 }
 0x46e   :  { %v825_v32 = vmul.f32 %v823_v24, %v780_v31  ;;  %817 = vrot.lane.b32.xlu0 %v780_v31, %s1880_s19  ;;  %v2183_v4 = vsel %vm2154_vm13, %v1074_v59, %v1070_v6  ;;  %v834_v33 = vmul.f32 %v832_v22, %v780_v31  ;;  %v800_v38 = vmul.f32 %v798_v34, %v780_v31 }
 0x470   :  { %827 = vrot.lane.b32.xlu1 %v825_v32, %s1887_s24 }
 0x472   :  { %836 = vrot.lane.b32.xlu0 %v834_v33, %s1886_s23 }
 0x474   :  { %846 = vrot.lane.b32.xlu1 %v800_v38, %s1887_s24 }
 0x476   :  { %928 = vrot.lane.b32.xlu0 %v2082_v27, %s1890_s25 }
 0x478   :  { %896 = vrot.lane.b32.xlu1 %v2084_v29, %s1890_s25 }
 0x47a   :  { %v759_v39 = vpop.permute.xlu0 %758  ;;  %v866_v40 = vpop.permute.xlu1 %865  ;;  %887 = vrot.lane.b32.xlu0 %v2082_v27, %s1891_s26 }
 0x47b   :  { %v763_v41 = vmul.f32 %v759_v39, %v2074_v19  ;;  %v870_v42 = vmul.f32 %v866_v40, %v2080_v21  ;;  %v761_v44 = vmul.f32 %v759_v39, %v756_v48  ;;  %v868_v45 = vmul.f32 %v866_v40, %v2087_v35 }
 0x47c   :  { %905 = vrot.lane.b32.xlu1 %v2080_v21, %s1890_s25  ;;  %v876_v48 = vsel %vm2148_vm12, %v875_v23, 0.0 }
 0x47d   :  { %v871_v46 = vadd.f32 %v870_v42, %v763_v41  ;;  %v869_v50 = vadd.f32 %v868_v45, %v761_v44  ;;  %v2219_v5 = vsel %vm2154_vm13, %v880_v55, %v876_v48 }
 0x47e   :  { %883 = vrot.lane.b32.xlu0 %v2087_v35, %s1880_s19 }
 0x47f   :  { %v1060_v47 = vpop.permute.xlu0 %1059  ;;  %v963_v49 = vpop.permute.xlu1 %962 }
 0x480   :  { %v965_v52 = vmul.f32 %v963_v49, %v2093_v37  ;;  %v967_v54 = vmul.f32 %v963_v49, %v2082_v27  ;;  %v1062_v57 = vmul.f32 %v1060_v47, %v2090_v36  ;;  %v1064_v3 = vmul.f32 %v1060_v47, %v2084_v29 }
 0x482   :  { %v966_v60 = vadd.f32 %v965_v52, %v869_v50  ;;  %v968_v62 = vadd.f32 %v967_v54, %v871_v46  ;;  %1016 = vrot.lane.b32.xlu0 %v2082_v27, %s1892_s27 }
 0x483   :  { %v788_v35 = vpop.permute.xlu1 %787  ;;  %v808_v10 = vpop.permute.xlu0 %807 }
 0x484   :  { %v2213_v63 = vadd.f32 %v1062_v57, %v966_v60  ;;  %v2215_v2 = vadd.f32 %v1064_v3, %v968_v62  ;;  %v790_v9 = vmul.f32 %v788_v35, %v780_v31  ;;  %v810_v13 = vmul.f32 %v808_v10, %v780_v31 }
 0x485   :  { %v2281_v57 = vmul.f32 %v2127_v51, %v2127_v51 }
 0x486   :  { %915 = vrot.lane.b32.xlu0 %v2219_v5, %s1880_s19  ;;  %1156 = vrot.lane.b32.xlu1 %v2215_v2, %s1881_s20  ;;  %v2227_v61 = vmul.f32 %v2213_v63, %v2131_v43 }
 0x487   :  { %v783_v56 = vpop.permute.xlu1 %782  ;;  %v1219_v35 = vadd.f32 1e-09, %v2281_v57 }
 0x488   :  { %v785_v43 = vmul.f32 %v783_v56, %v780_v31 }
 0x489   :  { %1802 = vrsqrt.f32 %v1219_v35 }
 0x48a   :  { %1025 = vrot.lane.b32.xlu0 %v2074_v19, %s1892_s27  ;;  %1169 = vrot.lane.b32.xlu1 %v2215_v2, %s1880_s19 }
 0x48b   :  { %v920_v12 = vpop.permute.xlu1 %919 }
 0x48c   :  { %v922_v14 = vmul.f32 %v920_v12, %v2219_v5 }
 0x48e   :  { %792 = vrot.lane.b32.xlu0 %v790_v9, %s1887_s24  ;;  %802 = vrot.lane.b32.xlu1 %v800_v38, %s1886_s23 }
 0x492   :  { %924 = vrot.lane.b32.xlu0 %v922_v14, %s1887_s24  ;;  %812 = vrot.lane.b32.xlu1 %v810_v13, %s1881_s20 }
 0x4e0   :  { %v2238_v15 = vpop.permute.xlu0 %817 }
 0x4e1   :  { %v856_v17 = vmul.f32 %v2238_v15, %v785_v43 }
 0x4e2   :  { %v828_v18 = vpop.permute.xlu1 %827 }
 0x4e3   :  { %v830_v0 = vadd.f32 %v828_v18, %v785_v43  ;;  %858 = vrot.lane.b32.xlu0 %v856_v17, %s1881_s20 }
 0x4e4   :  { %v837_v20 = vpop.permute.xlu0 %836 }
 0x4e5   :  { %v839_v24 = vadd.f32 %v837_v20, %v830_v0 }
 0x4e6   :  { %v847_v25 = vpop.permute.xlu1 %846 }
 0x4e7   :  { %v840_v26 = vmul.f32 %v839_v24, %v2238_v15  ;;  %v849_v31 = vadd.f32 %v847_v25, %v785_v43  ;;  %v2300_v25 = vpop.eup %1802 }
 0x4e8   :  { %v929_v28 = vpop.permute.xlu0 %928 }
 0x4e9   :  { %v931_v59 = vmul.f32 %v929_v28, %v2219_v5  ;;  %842 = vrot.lane.b32.xlu0 %v840_v26, %s1887_s24  ;;  %v850_v22 = vmul.f32 %v849_v31, %v2238_v15 }
 0x4ea   :  { %v897_v30 = vpop.permute.xlu1 %896 }
 0x4eb   :  { %933 = vrot.lane.b32.xlu1 %v931_v59, %s1886_s23  ;;  %v899_v58 = vmul.f32 %v897_v30, %v2219_v5 }
 0x4ec   :  { %v888_v6 = vpop.permute.xlu0 %887 }
 0x4ed   :  { %1182 = vrot.lane.b32.xlu0 %v2215_v2, %s1883_s22  ;;  %v890_v39 = vmul.f32 %v888_v6, %v2219_v5 }
 0x4ee   :  { %v906_v32 = vpop.permute.xlu1 %905 }
 0x4ef   :  { %943 = vrot.lane.b32.xlu1 %v899_v58, %s1887_s24  ;;  %v908_v33 = vmul.f32 %v906_v32, %v2219_v5 }
 0x4f0   :  { %v884_v34 = vpop.permute.xlu0 %883 }
 0x4f1   :  { %901 = vrot.lane.b32.xlu0 %v899_v58, %s1886_s23  ;;  %v2285_v56 = vmul.f32 %v884_v34, %v2219_v5 }
 0x4f3   :  { %852 = vrot.lane.b32.xlu1 %v850_v22, %s1886_s23 }
 0x4f4   :  { %v1017_v41 = vpop.permute.xlu0 %1016 }
 0x4f5   :  { %910 = vrot.lane.b32.xlu0 %v908_v33, %s1881_s20  ;;  %v1019_v42 = vmul.f32 %v1017_v41, %v2179_v7 }
 0x4f7   :  { %993 = vrot.lane.b32.xlu1 %v2080_v21, %s1892_s27 }
 0x4f8   :  { %v1157_v38 = vpop.permute.xlu1 %1156  ;;  %v2269_v46 = vpop.permute.xlu0 %915 }
 0x4f9   :  { %v1159_v40 = vmul.f32 %v1157_v38, %v1963_v1  ;;  %v953_v31 = vmul.f32 %v2269_v46, %v2285_v56 }
 0x4fb   :  { %892 = vrot.lane.b32.xlu1 %v890_v39, %s1887_s24  ;;  %1161 = vrot.lane.b32.xlu0 %v1159_v40, %s1887_s24 }
 0x4fc   :  { %v1170_v44 = vpop.permute.xlu1 %1169  ;;  %v1026_v23 = vpop.permute.xlu0 %1025 }
 0x4fd   :  { %v1172_v45 = vmul.f32 %v1170_v44, %v1963_v1  ;;  %v1028_v47 = vmul.f32 %v1026_v23, %v2179_v7 }
 0x4ff   :  { %984 = vrot.lane.b32.xlu1 %v2074_v19, %s1893_s28  ;;  %1021 = vrot.lane.b32.xlu0 %v1019_v42, %s1887_s24 }
 0x500   :  { %v803_v49 = vpop.permute.xlu1 %802 }
 0x503   :  { %980 = vrot.lane.b32.xlu1 %v2093_v37, %s1880_s19  ;;  %1174 = vrot.lane.b32.xlu0 %v1172_v45, %s1881_s20  ;;  %v793_v37 = vpop.permute.xlu0 %792 }
 0x504   :  { %v813_v54 = vpop.permute.xlu1 %812  ;;  %v795_v48 = vadd.f32 %v793_v37, %v785_v43 }
 0x506   :  { %v805_v60 = vadd.f32 %v803_v49, %v795_v48 }
 0x507   :  { %1002 = vrot.lane.b32.xlu1 %v2084_v29, %s1891_s26  ;;  %v925_v50 = vpop.permute.xlu0 %924 }
 0x508   :  { %v815_v12 = vadd.f32 %v813_v54, %v805_v60  ;;  %v927_v5 = vadd.f32 %v925_v50, %v2285_v56 }
 0x50a   :  { %v820_v17 = vmul.f32 %v2238_v15, %v815_v12 }
 0x50b   :  { %1165 = vrot.lane.b32.xlu1 %v1159_v40, %s1886_s23  ;;  %v2324_v40 = vld [vmem:[%s2619_s0] sm:$0xff]  ;;  %s1896_s0 = smov 5  }
 0x50c   :  { %v2328_v41 = vmul.f32 %v2324_v40, %v2213_v63 }
 0x50f   :  { %1030 = vrot.lane.b32.xlu1 %v1028_v47, %s1886_s23 }
 0x513   :  { %1178 = vrot.lane.b32.xlu1 %v1172_v45, %s1887_s24 }
 0x517   :  { %1012 = vrot.lane.b32.xlu1 %v2179_v7, %s1880_s19 }
 0x555   :  { %v859_v52 = vpop.permute.xlu0 %858 }
 0x55b   :  { %v843_v55 = vpop.permute.xlu0 %842 }
 0x55d   :  { %v934_v3 = vpop.permute.xlu1 %933 }
 0x55e   :  { %v936_v0 = vadd.f32 %v934_v3, %v927_v5 }
 0x55f   :  { %v1183_v62 = vpop.permute.xlu0 %1182 }
 0x560   :  { %v1185_v9 = vmul.f32 %v1183_v62, %v1963_v1  ;;  %v845_v1 = vadd.f32 %v843_v55, %v820_v17  ;;  %v937_v26 = vmul.f32 %v936_v0, %v2269_v46 }
 0x561   :  { %v944_v10 = vpop.permute.xlu1 %943 }
 0x562   :  { %v946_v13 = vadd.f32 %v944_v10, %v2285_v56  ;;  %1187 = vrot.lane.b32.xlu1 %v1185_v9, %s1886_s23 }
 0x563   :  { %v902_v58 = vpop.permute.xlu0 %901 }
 0x564   :  { %v947_v14 = vmul.f32 %v946_v13, %v2269_v46 }
 0x565   :  { %v853_v43 = vpop.permute.xlu1 %852 }
 0x566   :  { %1191 = vrot.lane.b32.xlu1 %v2215_v2, %s1882_s21  ;;  %949 = vrot.lane.b32.xlu0 %v947_v14, %s1886_s23  ;;  %v855_v20 = vadd.f32 %v853_v43, %v845_v1 }
 0x567   :  { %v911_v22 = vpop.permute.xlu0 %910 }
 0x568   :  { %v861_v28 = vadd.f32 %v859_v52, %v855_v20 }
 0x569   :  { %v994_v18 = vpop.permute.xlu1 %993 }
 0x56a   :  { %v996_v24 = vmul.f32 %v994_v18, %v2179_v7  ;;  %1256 = vrot.lane.b32.xlu1 %v2127_v51, %s1872_s2  ;;  %v862_v30 = vmul.f32 2.0, %v861_v28 }
 0x56c   :  { %1040 = vrot.lane.b32.xlu0 %v996_v24, %s1887_s24  ;;  %v1203_v32 = vmul.f32 0.5, %v862_v30 }
 0x56d   :  { %v893_v15 = vpop.permute.xlu1 %892  ;;  %v1162_v34 = vpop.permute.xlu0 %1161 }
 0x56e   :  { %1444 = vrot.lane.b32.xlu1 %v2300_v25, %s1872_s2  ;;  %v1164_v45 = vadd.f32 %v1162_v34, %v2328_v41  ;;  %v895_v3 = vadd.f32 %v893_v15, %v2285_v56  ;;  %v1201_v15 = vmul.f32 %v2213_v63, %v2135_v53 }
 0x570   :  { %939 = vrot.lane.b32.xlu0 %v937_v26, %s1887_s24  ;;  %v904_v35 = vadd.f32 %v902_v58, %v895_v3 }
 0x571   :  { %v985_v59 = vpop.permute.xlu1 %984  ;;  %v1022_v44 = vpop.permute.xlu0 %1021 }
 0x572   :  { %998 = vrot.lane.b32.xlu1 %v996_v24, %s1886_s23  ;;  %v987_v39 = vmul.f32 %v985_v59, %v2179_v7  ;;  %v913_v12 = vadd.f32 %v911_v22, %v904_v35 }
 0x574   :  { %955 = vrot.lane.b32.xlu0 %v953_v31, %s1881_s20  ;;  %v918_v43 = vmul.f32 %v2269_v46, %v913_v12 }
 0x575   :  { %v981_v6 = vpop.permute.xlu1 %980  ;;  %v1175_v49 = vpop.permute.xlu0 %1174 }
 0x576   :  { %1113 = vrot.lane.b32.xlu1 %v2074_v19, %s1894_s29  ;;  %v983_v47 = vmul.f32 %v981_v6, %v2179_v7  ;;  %v1237_v6 = vmul.f32 %v2213_v63, %v2137_v8 }
 0x578   :  { %1205 = vrot.lane.b32.xlu0 %v1203_v32, %s1872_s2  ;;  %v1024_v52 = vadd.f32 %v1022_v44, %v983_v47 }
 0x579   :  { %v1003_v33 = vpop.permute.xlu1 %1002 }
 0x57a   :  { %1122 = vrot.lane.b32.xlu1 %v2082_v27, %s1893_s28  ;;  %v1005_v42 = vmul.f32 %v1003_v33, %v2179_v7 }
 0x57c   :  { %1262 = vrot.lane.b32.xlu0 %v2281_v57, %s1895_s30 }
 0x57d   :  { %v1166_v38 = vpop.permute.xlu1 %1165 }
 0x57e   :  { %1226 = vrot.lane.b32.xlu1 %v2135_v53, %s1872_s2  ;;  %v1168_v37 = vadd.f32 %v1166_v38, %v1164_v45  ;;  %v2387_v45 = vmul.f32 %v2067_v16, %v2067_v16 }
 0x580   :  { %989 = vrot.lane.b32.xlu0 %v987_v39, %s1887_s24  ;;  %v2338_v50 = vadd.f32 %v1175_v49, %v1168_v37 }
 0x581   :  { %v1031_v19 = vpop.permute.xlu1 %1030 }
 0x582   :  { %1090 = vrot.lane.b32.xlu1 %v2084_v29, %s1893_s28  ;;  %v1033_v29 = vadd.f32 %v1031_v19, %v1024_v52  ;;  %v1200_v0 = vmul.f32 %v2338_v50, %v2127_v51 }
 0x584   :  { %1007 = vrot.lane.b32.xlu0 %v1005_v42, %s1881_s20  ;;  %v1202_v46 = vadd.f32 %v1201_v15, %v1200_v0 }
 0x585   :  { %v1179_v23 = vpop.permute.xlu1 %1178 }
 0x586   :  { %v1181_v7 = vadd.f32 %v1179_v23, %v2328_v41 }
 0x588   :  { %1320 = vrot.lane.b32.xlu0 %v2127_v51, %s1896_s0 }
 0x589   :  { %v2340_v54 = vpop.permute.xlu1 %1012 }
 0x58a   :  { %v1034_v48 = vmul.f32 %v1033_v29, %v2340_v54  ;;  %v1050_v28 = vmul.f32 %v2340_v54, %v983_v47 }
 0x58c   :  { %1221 = vrot.lane.b32.xlu0 %v2338_v50, %s1872_s2 }
 0x590   :  { %1036 = vrot.lane.b32.xlu0 %v1034_v48, %s1887_s24 }
 0x5d4   :  { %v1188_v55 = vpop.permute.xlu1 %1187 }
 0x5d5   :  { %v2348_v60 = vadd.f32 %v1188_v55, %v1181_v7 }
 0x5d7   :  { %1277 = vrot.lane.b32.xlu0 %v2348_v60, %s1896_s0  ;;  %v1231_v1 = vmul.f32 %v2348_v60, %v2127_v51 }
 0x5d8   :  { %v1192_v62 = vpop.permute.xlu1 %1191  ;;  %v950_v10 = vpop.permute.xlu0 %949 }
 0x5d9   :  { %v1194_v9 = vmul.f32 %v2324_v40, %v1192_v62 }
 0x5db   :  { %1196 = vrot.lane.b32.xlu0 %v1194_v9, %s1887_s24 }
 0x5dc   :  { %v1257_v20 = vpop.permute.xlu1 %1256 }
 0x5de   :  { %v1041_v13 = vpop.permute.xlu0 %1040 }
 0x5df   :  { %v1043_v14 = vadd.f32 %v1041_v13, %v983_v47  ;;  %1287 = vrot.lane.b32.xlu0 %v2137_v8, %s1896_s0 }
 0x5e0   :  { %v2368_v31 = vpop.permute.xlu1 %1444 }
 0x5e1   :  { %v1044_v56 = vmul.f32 %v1043_v14, %v2340_v54 }
 0x5e2   :  { %v940_v17 = vpop.permute.xlu0 %939 }
 0x5e3   :  { %v942_v5 = vadd.f32 %v940_v17, %v918_v43  ;;  %1046 = vrot.lane.b32.xlu1 %v1044_v56, %s1886_s23 }
 0x5e4   :  { %v999_v33 = vpop.permute.xlu1 %998 }
 0x5e5   :  { %v952_v18 = vadd.f32 %v950_v10, %v942_v5 }
 0x5e6   :  { %v956_v24 = vpop.permute.xlu0 %955 }
 0x5e7   :  { %1233 = vrot.lane.b32.xlu1 %v1231_v1, %s1895_s30  ;;  %v958_v26 = vadd.f32 %v956_v24, %v952_v18  ;;  %v1302_v1 = vmul.f32 %v2213_v63, %v2141_v11 }
 0x5e8   :  { %v1114_v44 = vpop.permute.xlu1 %1113 }
 0x5e9   :  { %v959_v58 = vmul.f32 2.0, %v958_v26 }
 0x5ea   :  { %v1206_v59 = vpop.permute.xlu0 %1205 }
 0x5eb   :  { %v1208_v30 = vsub.f32 %v1202_v46, %v1206_v59  ;;  %1052 = vrot.lane.b32.xlu1 %v1050_v28, %s1881_s20  ;;  %v1243_v22 = vmul.f32 0.5, %v959_v58 }
 0x5ec   :  { %v1123_v37 = vpop.permute.xlu1 %1122 }
 0x5ed   :  { %1210 = vrot.lane.b32.xlu0 %v1208_v30, %s1872_s2  ;;  %v1125_v55 = vmul.f32 %v1123_v37, %v2183_v4 }
 0x5ee   :  { %v2373_v32 = vpop.permute.xlu0 %1262 }
 0x5ef   :  { %1239 = vrot.lane.b32.xlu1 %v1237_v6, %s1895_s30  ;;  %v1265_v23 = vadd.f32 %v2373_v32, %v2387_v45 }
 0x5f0   :  { %v1227_v7 = vpop.permute.xlu1 %1226 }
 0x5f1   :  { %1214 = vrot.lane.b32.xlu0 %v2067_v16, %s1862_s11  ;;  %v1266_v49 = vadd.f32 1e-09, %v1265_v23  ;;  %v1229_v26 = vmul.f32 %v1227_v7, %v2215_v2 }
 0x5f2   :  { %v990_v34 = vpop.permute.xlu0 %989 }
 0x5f3   :  { %v992_v38 = vadd.f32 %v990_v34, %v983_v47  ;;  %1245 = vrot.lane.b32.xlu1 %v1243_v22, %s1862_s11  ;;  %v1116_v47 = vmul.f32 %v1114_v44, %v2183_v4 }
 0x5f4   :  { %v1091_v3 = vpop.permute.xlu1 %1090 }
 0x5f5   :  { %1081 = vrot.lane.b32.xlu0 %v2082_v27, %s1894_s29  ;;  %v1001_v39 = vadd.f32 %v999_v33, %v992_v38  ;;  %v1259_v27 = vmul.f32 %v1257_v20, %v2067_v16  ;;  %v1093_v62 = vmul.f32 %v1091_v3, %v2183_v4 }
 0x5f6   :  { %v1008_v19 = vpop.permute.xlu0 %1007 }
 0x5f7   :  { %v1010_v42 = vadd.f32 %v1008_v19, %v1001_v39  ;;  %1077 = vrot.lane.b32.xlu1 %v2090_v36, %s1880_s19  ;;  %v2398_v36 = vmul.f32 %v2368_v31, %v1259_v27 }
 0x5f9   :  { %1324 = vrot.lane.b32.xlu0 %v2067_v16, %s1897_s7  ;;  %v1456_v29 = vmul.f32 %v2398_v36, %v2398_v36  ;;  %v1015_v24 = vmul.f32 %v2340_v54, %v1010_v42 }
 0x5fa   :  { %v1321_v52 = vpop.permute.xlu0 %1320 }
 0x5fb   :  { %1448 = vrot.lane.b32.xlu1 %v2300_v25, %s1896_s0  ;;  %v2406_v48 = vmul.f32 %v1321_v52, %v2067_v16 }
 0x5fd   :  { %1099 = vrot.lane.b32.xlu0 %v2080_v21, %s1893_s28  ;;  %v1457_v21 = vsub.f32 %v1266_v49, %v1456_v29 }
 0x5fe   :  { %v1222_v9 = vpop.permute.xlu0 %1221 }
 0x5ff   :  { %1118 = vrot.lane.b32.xlu1 %v1116_v47, %s1887_s24  ;;  %1804 = vrsqrt.f32 %v1457_v21  ;;  %v1224_v20 = vmul.f32 %v1222_v9, %v2067_v16 }
 0x601   :  { %1267 = vrot.lane.b32.xlu0 %v2338_v50, %s1896_s0  ;;  %v1230_v30 = vadd.f32 %v1229_v26, %v1224_v20 }
 0x602   :  { %v1037_v10 = vpop.permute.xlu0 %1036 }
 0x603   :  { %1271 = vrot.lane.b32.xlu1 %v2135_v53, %s1896_s0  ;;  %v1039_v46 = vadd.f32 %v1037_v10, %v1015_v24 }
 0x605   :  { %1329 = vrot.lane.b32.xlu0 %v2406_v48, %s1887_s24 }
 0x607   :  { %1334 = vrot.lane.b32.xlu1 %v2387_v45, %s1887_s24 }
 0x609   :  { %1460 = vrot.lane.b32.xlu0 %v2398_v36, %s1897_s7  ;;  %v2422_v35 = vpop.eup %1804 }
 0x60b   :  { %1127 = vrot.lane.b32.xlu1 %v1125_v55, %s1886_s23 }
 0x60d   :  { %1109 = vrot.lane.b32.xlu0 %v2183_v4, %s1880_s19 }
 0x60f   :  { %1137 = vrot.lane.b32.xlu1 %v1093_v62, %s1887_s24 }
 0x613   :  { %1466 = vrot.lane.b32.xlu1 %v2422_v35, %s1897_s7 }
 0x649   :  { %v1278_v12 = vpop.permute.xlu0 %1277 }
 0x64a   :  { %v1280_v13 = vmul.f32 %v1278_v12, %v2067_v16 }
 0x64c   :  { %1282 = vrot.lane.b32.xlu0 %v1280_v13, %s1887_s24 }
 0x64d   :  { %v1197_v14 = vpop.permute.xlu0 %1196 }
 0x64e   :  { %v2429_v56 = vadd.f32 %v1197_v14, %v2328_v41 }
 0x650   :  { %v1296_v43 = vmul.f32 %v2429_v56, %v2127_v51 }
 0x651   :  { %v1288_v17 = vpop.permute.xlu0 %1287 }
 0x652   :  { %v1290_v5 = vmul.f32 %v1288_v17, %v2215_v2  ;;  %1298 = vrot.lane.b32.xlu1 %v1296_v43, %s1895_s30 }
 0x654   :  { %1292 = vrot.lane.b32.xlu0 %v1290_v5, %s1887_s24 }
 0x655   :  { %v1047_v18 = vpop.permute.xlu1 %1046 }
 0x656   :  { %1304 = vrot.lane.b32.xlu1 %v1302_v1, %s1895_s30  ;;  %v1049_v59 = vadd.f32 %v1047_v18, %v1039_v46 }
 0x659   :  { %v1234_v0 = vpop.permute.xlu1 %1233 }
 0x65a   :  { %v1236_v6 = vadd.f32 %v1234_v0, %v1230_v30 }
 0x65d   :  { %v1053_v15 = vpop.permute.xlu1 %1052 }
 0x65e   :  { %v1055_v22 = vadd.f32 %v1053_v15, %v1049_v59 }
 0x65f   :  { %v1211_v28 = vpop.permute.xlu0 %1210 }
 0x660   :  { %v1213_v63 = vsub.f32 %v2324_v40, %v1211_v28  ;;  %v1056_v19 = vmul.f32 2.0, %v1055_v22 }
 0x661   :  { %v1240_v58 = vpop.permute.xlu1 %1239 }
 0x662   :  { %v1242_v34 = vadd.f32 %v1240_v58, %v1236_v6  ;;  %v1308_v47 = vmul.f32 0.5, %v1056_v19 }
 0x663   :  { %v2443_v33 = vpop.permute.xlu0 %1214 }
 0x664   :  { %v1217_v38 = vsub.f32 %v1213_v63, %v2443_v33 }
 0x665   :  { %v1246_v39 = vpop.permute.xlu1 %1245 }
 0x666   :  { %v2447_v54 = vmul.f32 %v2368_v31, %v1217_v38  ;;  %v1248_v42 = vsub.f32 %v1242_v34, %v1246_v39 }
 0x667   :  { %v1082_v44 = vpop.permute.xlu0 %1081 }
 0x668   :  { %1250 = vrot.lane.b32.xlu0 %v1248_v42, %s1897_s7  ;;  %v1509_v27 = vmul.f32 %v2447_v54, %v2398_v36  ;;  %v1084_v49 = vmul.f32 %v1082_v44, %v2183_v4 }
 0x669   :  { %v1078_v23 = vpop.permute.xlu1 %1077 }
 0x66a   :  { %1511 = vrot.lane.b32.xlu1 %v1509_v27, %s1897_s7  ;;  %v2468_v17 = vmul.f32 %v1078_v23, %v2183_v4 }
 0x66b   :  { %v1325_v37 = vpop.permute.xlu0 %1324 }
 0x66c   :  { %1310 = vrot.lane.b32.xlu0 %v1308_v47, %s1898_s8  ;;  %v1327_v9 = vmul.f32 %v1325_v37, %v2067_v16 }
 0x66d   :  { %v1449_v52 = vpop.permute.xlu1 %1448 }
 0x66e   :  { %1086 = vrot.lane.b32.xlu1 %v1084_v49, %s1887_s24  ;;  %v2471_v5 = vmul.f32 %v1449_v52, %v2406_v48 }
 0x66f   :  { %v1100_v29 = vpop.permute.xlu0 %1099 }
 0x670   :  { %1517 = vrot.lane.b32.xlu0 %v2447_v54, %s1897_s7  ;;  %v1102_v55 = vmul.f32 %v1100_v29, %v2183_v4  ;;  %v1479_v38 = vmul.f32 %v2471_v5, %v2471_v5 }
 0x671   :  { %v1119_v21 = vpop.permute.xlu1 %1118 }
 0x672   :  { %1095 = vrot.lane.b32.xlu1 %v1093_v62, %s1886_s23  ;;  %v1121_v18 = vadd.f32 %v1119_v21, %v2468_v17 }
 0x673   :  { %v1268_v7 = vpop.permute.xlu0 %1267 }
 0x674   :  { %1407 = vrot.lane.b32.xlu0 %v2127_v51, %s1899_s9  ;;  %v1270_v10 = vmul.f32 %v1268_v7, %v2067_v16 }
 0x675   :  { %v1272_v3 = vpop.permute.xlu1 %1271 }
 0x676   :  { %v1274_v12 = vmul.f32 %v1272_v3, %v2215_v2  ;;  %1104 = vrot.lane.b32.xlu1 %v1102_v55, %s1881_s20 }
 0x677   :  { %v1330_v13 = vpop.permute.xlu0 %1329 }
 0x678   :  { %v1332_v14 = vadd.f32 %v1330_v13, %v1327_v9  ;;  %1420 = vrot.lane.b32.xlu0 %v2067_v16, %s1900_s10  ;;  %v1275_v62 = vadd.f32 %v1274_v12, %v1270_v10 }
 0x679   :  { %v1335_v43 = vpop.permute.xlu1 %1334 }
 0x67a   :  { %1358 = vrot.lane.b32.xlu1 %v2137_v8, %s1899_s9 }
 0x67b   :  { %v1461_v1 = vpop.permute.xlu0 %1460 }
 0x67c   :  { %v1463_v0 = vmul.f32 %v1461_v1, %v2471_v5  ;;  %1349 = vrot.lane.b32.xlu0 %v2348_v60, %s1899_s9 }
 0x67d   :  { %v1128_v20 = vpop.permute.xlu1 %1127 }
 0x67e   :  { %v1464_v24 = vsub.f32 %v1332_v14, %v1463_v0  ;;  %v1130_v15 = vadd.f32 %v1128_v20, %v1121_v18  ;;  %1368 = vrot.lane.b32.xlu1 %v2429_v56, %s1899_s9  ;;  %v2494_v56 = vadd.f32 %v1335_v43, %v2387_v45 }
 0x67f   :  { %v2481_v4 = vpop.permute.xlu0 %1109 }
 0x680   :  { %v1131_v48 = vmul.f32 %v1130_v15, %v2481_v4  ;;  %v1147_v46 = vmul.f32 %v2481_v4, %v2468_v17 }
 0x681   :  { %v1138_v26 = vpop.permute.xlu1 %1137 }
 0x682   :  { %v1140_v8 = vadd.f32 %v1138_v26, %v2468_v17  ;;  %1378 = vrot.lane.b32.xlu1 %v2141_v11, %s1899_s9  ;;  %1133 = vrot.lane.b32.xlu0 %v1131_v48, %s1887_s24  ;;  %v1338_v11 = vadd.f32 %v2494_v56, %v2373_v32 }
 0x684   :  { %v1141_v60 = vmul.f32 %v1140_v8, %v2481_v4  ;;  %v1339_v22 = vadd.f32 1e-09, %v1338_v11 }
 0x685   :  { %v2496_v59 = vpop.permute.xlu1 %1466 }
 0x686   :  { %1143 = vrot.lane.b32.xlu0 %v1141_v60, %s1886_s23  ;;  %v2501_v30 = vmul.f32 %v2496_v59, %v1464_v24  ;;  %v1480_v19 = vsub.f32 %v1339_v22, %v1479_v38 }
 0x688   :  { %v1481_v39 = vmul.f32 %v2501_v30, %v2501_v30 }
 0x68a   :  { %1149 = vrot.lane.b32.xlu0 %v1147_v46, %s1881_s20  ;;  %v1482_v44 = vsub.f32 %v1480_v19, %v1481_v39 }
 0x68c   :  { %1806 = vrsqrt.f32 %v1482_v44 }
 0x696   :  { %v1807_v12 = vpop.eup %1806 }
 0x6be   :  { %v1283_v28 = vpop.permute.xlu0 %1282 }
 0x6bf   :  { %v1285_v6 = vadd.f32 %v1283_v28, %v1275_v62 }
 0x6c4   :  { %v1299_v63 = vpop.permute.xlu1 %1298 }
 0x6c6   :  { %v1293_v58 = vpop.permute.xlu0 %1292 }
 0x6c7   :  { %v1295_v34 = vadd.f32 %v1293_v58, %v1285_v6  ;;  %v1387_v6 = vmul.f32 %v2328_v41, %v2127_v51 }
 0x6c8   :  { %v1305_v27 = vpop.permute.xlu1 %1304 }
 0x6c9   :  { %v1301_v42 = vadd.f32 %v1299_v63, %v1295_v34 }
 0x6cb   :  { %v1307_v47 = vadd.f32 %v1305_v27, %v1301_v42 }
 0x6da   :  { %v1251_v23 = vpop.permute.xlu0 %1250 }
 0x6db   :  { %v1253_v32 = vsub.f32 %v2324_v40, %v1251_v23 }
 0x6dc   :  { %v1512_v49 = vpop.permute.xlu1 %1511 }
 0x6dd   :  { %v1254_v37 = vsub.f32 %v1253_v32, %v2443_v33 }
 0x6de   :  { %v1311_v52 = vpop.permute.xlu0 %1310 }
 0x6df   :  { %v1514_v29 = vsub.f32 %v1254_v37, %v1512_v49  ;;  %v1313_v21 = vsub.f32 %v1307_v47, %v1311_v52 }
 0x6e0   :  { %v1087_v10 = vpop.permute.xlu1 %1086 }
 0x6e1   :  { %v2510_v7 = vmul.f32 %v1514_v29, %v2496_v59  ;;  %1315 = vrot.lane.b32.xlu1 %v1313_v21, %s1897_s7 }
 0x6e2   :  { %v1518_v55 = vpop.permute.xlu0 %1517 }
 0x6e3   :  { %v1526_v3 = vmul.f32 %v2510_v7, %v2501_v30  ;;  %v1520_v9 = vmul.f32 %v1518_v55, %v2471_v5 }
 0x6e4   :  { %v1096_v14 = vpop.permute.xlu1 %1095 }
 0x6e5   :  { %1528 = vrot.lane.b32.xlu1 %v1526_v3, %s1897_s7  ;;  %1522 = vrot.lane.b32.xlu0 %v1520_v9, %s1897_s7 }
 0x6e6   :  { %v1408_v13 = vpop.permute.xlu0 %1407 }
 0x6e7   :  { %v2526_v43 = vmul.f32 %v1408_v13, %v2067_v16 }
 0x6e8   :  { %v1105_v1 = vpop.permute.xlu1 %1104 }
 0x6e9   :  { %1411 = vrot.lane.b32.xlu1 %v2067_v16, %s1895_s30  ;;  %1532 = vrot.lane.b32.xlu0 %v1807_v12, %s1897_s7 }
 0x6ea   :  { %v1421_v62 = vpop.permute.xlu0 %1420 }
 0x6eb   :  { %v2533_v18 = vmul.f32 %v1421_v62, %v2067_v16 }
 0x6ed   :  { %1340 = vrot.lane.b32.xlu1 %v2338_v50, %s1899_s9  ;;  %1452 = vrot.lane.b32.xlu0 %v2300_v25, %s1899_s9  ;;  %v1359_v50 = vpop.permute.xlu1 %1358 }
 0x6ee   :  { %v1350_v0 = vpop.permute.xlu0 %1349  ;;  %v1361_v8 = vmul.f32 %v1359_v50, %v2215_v2 }
 0x6ef   :  { %v1352_v25 = vmul.f32 %v1350_v0, %v2067_v16 }
 0x6f1   :  { %1344 = vrot.lane.b32.xlu0 %v2135_v53, %s1899_s9  ;;  %1416 = vrot.lane.b32.xlu1 %v2526_v43, %s1887_s24  ;;  %v1089_v53 = vadd.f32 %v1087_v10, %v2468_v17  ;;  %v1369_v48 = vpop.permute.xlu1 %1368 }
 0x6f3   :  { %v1098_v24 = vadd.f32 %v1096_v14, %v1089_v53 }
 0x6f4   :  { %v1134_v20 = vpop.permute.xlu0 %1133 }
 0x6f5   :  { %1470 = vrot.lane.b32.xlu0 %v2398_v36, %s1895_s30  ;;  %1425 = vrot.lane.b32.xlu1 %v2533_v18, %s1887_s24  ;;  %v1107_v15 = vadd.f32 %v1105_v1, %v1098_v24  ;;  %v1379_v46 = vpop.permute.xlu1 %1378 }
 0x6f7   :  { %v1112_v60 = vmul.f32 %v2481_v4, %v1107_v15 }
 0x6f8   :  { %v1144_v26 = vpop.permute.xlu0 %1143 }
 0x6f9   :  { %1429 = vrot.lane.b32.xlu1 %v2526_v43, %s1886_s23  ;;  %1354 = vrot.lane.b32.xlu0 %v1352_v25, %s1887_s24  ;;  %v1136_v17 = vadd.f32 %v1134_v20, %v1112_v60 }
 0x6fb   :  { %v1146_v11 = vadd.f32 %v1144_v26, %v1136_v17 }
 0x6fc   :  { %v1150_v28 = vpop.permute.xlu0 %1149 }
 0x6fd   :  { %1475 = vrot.lane.b32.xlu1 %v2422_v35, %s1895_s30  ;;  %1433 = vrot.lane.b32.xlu0 %v2387_v45, %s1886_s23  ;;  %v1371_v45 = vmul.f32 %v1369_v48, %v2067_v16  ;;  %v1381_v35 = vmul.f32 %v1379_v46, %v2215_v2  ;;  %v1152_v4 = vadd.f32 %v1150_v28, %v1146_v11 }
 0x6ff   :  { %v1153_v58 = vmul.f32 2.0, %v1152_v4 }
 0x701   :  { %1363 = vrot.lane.b32.xlu1 %v1361_v8, %s1887_s24  ;;  %1485 = vrot.lane.b32.xlu0 %v2471_v5, %s1900_s10  ;;  %v1399_v22 = vmul.f32 0.5, %v1153_v58 }
 0x705   :  { %1491 = vrot.lane.b32.xlu1 %v2501_v30, %s1900_s10  ;;  %1437 = vrot.lane.b32.xlu0 %v2281_v57, %s1872_s2 }
 0x709   :  { %1383 = vrot.lane.b32.xlu1 %v1381_v35, %s1886_s23  ;;  %1373 = vrot.lane.b32.xlu0 %v1371_v45, %s1886_s23 }
 0x70d   :  { %1389 = vrot.lane.b32.xlu1 %v1387_v6, %s1872_s2  ;;  %1497 = vrot.lane.b32.xlu0 %v1807_v12, %s1900_s10 }
 0x711   :  { %1395 = vrot.lane.b32.xlu0 %v2227_v61, %s1872_s2  ;;  %1401 = vrot.lane.b32.xlu1 %v1399_v22, %s1901_s1 }
 0x715   :  { %1536 = vrot.lane.b32.xlu0 %v2447_v54, %s1895_s30  ;;  %1542 = vrot.lane.b32.xlu1 %v2510_v7, %s1900_s10 }
 0x753   :  { %v1316_v57 = vpop.permute.xlu1 %1315 }
 0x754   :  { %v1318_v63 = vsub.f32 %v2324_v40, %v1316_v57 }
 0x756   :  { %v1319_v51 = vsub.f32 %v1318_v63, %v2443_v33 }
 0x757   :  { %v1523_v41 = vpop.permute.xlu0 %1522  ;;  %v1529_v38 = vpop.permute.xlu1 %1528 }
 0x758   :  { %v1525_v34 = vsub.f32 %v1319_v51, %v1523_v41 }
 0x75a   :  { %v1531_v39 = vsub.f32 %v1525_v34, %v1529_v38 }
 0x75b   :  { %v2573_v19 = vpop.permute.xlu0 %1532  ;;  %v1412_v42 = vpop.permute.xlu1 %1411 }
 0x75c   :  { %v2576_v61 = vmul.f32 %v2573_v19, %v1531_v39  ;;  %v1414_v25 = vmul.f32 %v1412_v42, %v2067_v16 }
 0x75e   :  { %1548 = vrot.lane.b32.xlu0 %v2576_v61, %s1897_s7 }
 0x75f   :  { %v1453_v44 = vpop.permute.xlu0 %1452  ;;  %v1341_v27 = vpop.permute.xlu1 %1340 }
 0x760   :  { %v1343_v12 = vmul.f32 %v1341_v27, %v2067_v16  ;;  %v2583_v62 = vmul.f32 %v1453_v44, %v2526_v43 }
 0x762   :  { %v1501_v57 = vmul.f32 %v2583_v62, %v2583_v62 }
 0x763   :  { %v1345_v23 = vpop.permute.xlu0 %1344  ;;  %v1417_v32 = vpop.permute.xlu1 %1416 }
 0x764   :  { %v1347_v10 = vmul.f32 %v1345_v23, %v2215_v2  ;;  %v1419_v53 = vadd.f32 %v1417_v32, %v1414_v25 }
 0x766   :  { %v1348_v14 = vadd.f32 %v1347_v10, %v1343_v12 }
 0x767   :  { %v1471_v47 = vpop.permute.xlu0 %1470  ;;  %v1426_v37 = vpop.permute.xlu1 %1425 }
 0x768   :  { %v1473_v50 = vmul.f32 %v1471_v47, %v2583_v62  ;;  %v1428_v2 = vadd.f32 %v1426_v37, %v2533_v18 }
 0x76a   :  { %v1474_v48 = vsub.f32 %v1419_v53, %v1473_v50 }
 0x76b   :  { %v1355_v49 = vpop.permute.xlu0 %1354  ;;  %v1430_v52 = vpop.permute.xlu1 %1429 }
 0x76c   :  { %v1357_v0 = vadd.f32 %v1355_v49, %v1348_v14  ;;  %v1432_v46 = vadd.f32 %v1430_v52, %v1428_v2 }
 0x76f   :  { %v1434_v29 = vpop.permute.xlu0 %1433  ;;  %v1476_v21 = vpop.permute.xlu1 %1475 }
 0x770   :  { %v1478_v8 = vmul.f32 %v1476_v21, %v1474_v48  ;;  %v1436_v60 = vadd.f32 %v1434_v29, %v2494_v56 }
 0x772   :  { %v1503_v41 = vmul.f32 %v1478_v8, %v1478_v8 }
 0x773   :  { %v1486_v55 = vpop.permute.xlu0 %1485  ;;  %v1364_v3 = vpop.permute.xlu1 %1363 }
 0x774   :  { %v1366_v20 = vadd.f32 %v1364_v3, %v1357_v0  ;;  %v1488_v43 = vmul.f32 %v1486_v55, %v2583_v62 }
 0x776   :  { %v1489_v45 = vsub.f32 %v1432_v46, %v1488_v43 }
 0x777   :  { %v1438_v9 = vpop.permute.xlu0 %1437  ;;  %v1492_v13 = vpop.permute.xlu1 %1491 }
 0x778   :  { %v1494_v28 = vmul.f32 %v1492_v13, %v1478_v8  ;;  %v1440_v11 = vadd.f32 %v1438_v9, %v1436_v60 }
 0x77a   :  { %v1441_v58 = vadd.f32 1e-09, %v1440_v11  ;;  %v1495_v6 = vsub.f32 %v1489_v45, %v1494_v28 }
 0x77b   :  { %v1374_v1 = vpop.permute.xlu0 %1373  ;;  %v1384_v24 = vpop.permute.xlu1 %1383 }
 0x77c   :  { %v1376_v15 = vadd.f32 %v1374_v1, %v1366_v20  ;;  %v1502_v63 = vsub.f32 %v1441_v58, %v1501_v57 }
 0x77e   :  { %v1386_v17 = vadd.f32 %v1384_v24, %v1376_v15  ;;  %v1504_v38 = vsub.f32 %v1502_v63, %v1503_v41 }
 0x77f   :  { %v1498_v26 = vpop.permute.xlu0 %1497  ;;  %v1390_v16 = vpop.permute.xlu1 %1389 }
 0x780   :  { %v1392_v4 = vadd.f32 %v1390_v16, %v1386_v17  ;;  %v1500_v18 = vmul.f32 %v1498_v26, %v1495_v6 }
 0x782   :  { %v1505_v34 = vmul.f32 %v1500_v18, %v1500_v18 }
 0x783   :  { %v1396_v35 = vpop.permute.xlu0 %1395  ;;  %v1402_v51 = vpop.permute.xlu1 %1401 }
 0x784   :  { %v1398_v22 = vadd.f32 %v1396_v35, %v1392_v4  ;;  %v1506_v42 = vsub.f32 %v1504_v38, %v1505_v34 }
 0x786   :  { %v1404_v56 = vsub.f32 %v1398_v22, %v1402_v51  ;;  %1808 = vrsqrt.f32 %v1506_v42 }
 0x787   :  { %v1537_v44 = vpop.permute.xlu0 %1536  ;;  %v1543_v32 = vpop.permute.xlu1 %1542 }
 0x788   :  { %v1405_v39 = vsub.f32 %v2324_v40, %v1404_v56  ;;  %v1539_v23 = vmul.f32 %v1537_v44, %v2583_v62  ;;  %v1545_v37 = vmul.f32 %v1543_v32, %v1478_v8 }
 0x78a   :  { %v1406_v27 = vsub.f32 %v1405_v39, %v2443_v33 }
 0x78c   :  { %v1540_v47 = vsub.f32 %v1406_v27, %v1539_v23 }
 0x78e   :  { %v1546_v52 = vsub.f32 %v1540_v47, %v1545_v37 }
 0x790   :  { %v1809_v55 = vpop.eup %1808 }
 0x7d0   :  { %v1549_v49 = vpop.permute.xlu0 %1548 }
 0x7d1   :  { %v1551_v29 = vmul.f32 %v1549_v49, %v1500_v18 }
 0x7d3   :  { %v1552_v21 = vsub.f32 %v1546_v52, %v1551_v29 }
 0x7d5   :  { %v1553_v3 = vmul.f32 %v1809_v55, %v1552_v21 }
 0x7d7   :  { %v1554_v9 = vmul.f32 %v1809_v55, %v1553_v3 }
 0x7d9   :  { %v1555_v10 = vmul.f32 %v1554_v9, %v1500_v18  ;;  %v1568_v40 = vmul.f32 %v1554_v9, %v1478_v8 }
 0x7db   :  { %1557 = vrot.lane.b32.xlu1 %v1555_v10, %s1887_s24 }
 0x7df   :  { %1570 = vrot.lane.b32.xlu1 %v1568_v40, %s1886_s23 }
 0x84d   :  { %v1558_v33 = vpop.permute.xlu1 %1557 }
 0x84e   :  { %v1560_v12 = vsub.f32 %v2576_v61, %v1558_v33  ;;  %v1587_v61 = vmul.f32 %v1554_v9, %v2583_v62 }
 0x850   :  { %v1561_v13 = vmul.f32 %v1560_v12, %v2573_v19 }
 0x851   :  { %v1571_v50 = vpop.permute.xlu1 %1570 }
 0x852   :  { %1563 = vrot.lane.b32.xlu0 %v1561_v13, %s1887_s24 }
 0x8c4   :  { %v1564_v14 = vpop.permute.xlu0 %1563 }
 0x8c5   :  { %v1566_v1 = vmul.f32 %v1564_v14, %v2501_v30  ;;  %v1581_v0 = vmul.f32 %v1564_v14, %v2471_v5 }
 0x8c7   :  { %v1567_v25 = vsub.f32 %v2510_v7, %v1566_v1  ;;  %1583 = vrot.lane.b32.xlu1 %v1581_v0, %s1887_s24 }
 0x8c9   :  { %v1573_v20 = vsub.f32 %v1567_v25, %v1571_v50 }
 0x8cb   :  { %v1574_v53 = vmul.f32 %v1573_v20, %v2496_v59 }
 0x8cd   :  { %1576 = vrot.lane.b32.xlu0 %v1574_v53, %s1887_s24 }
 0x8d1   :  { %1589 = vrot.lane.b32.xlu0 %v1587_v61, %s1881_s20 }
 0x8d5   :  { %1598 = vrot.lane.b32.xlu0 %v1574_v53, %s1891_s26 }
 0x8d9   :  { %1605 = vrot.lane.b32.xlu0 %v1554_v9, %s1891_s26 }
 0x939   :  { %v1584_v19 = vpop.permute.xlu1 %1583 }
 0x93f   :  { %v1577_v30 = vpop.permute.xlu0 %1576 }
 0x940   :  { %v1579_v5 = vmul.f32 %v1577_v30, %v2398_v36 }
 0x942   :  { %v1580_v7 = vsub.f32 %v2447_v54, %v1579_v5 }
 0x943   :  { %v1590_v15 = vpop.permute.xlu0 %1589 }
 0x944   :  { %v1586_v24 = vsub.f32 %v1580_v7, %v1584_v19 }
 0x946   :  { %v1592_v48 = vsub.f32 %v1586_v24, %v1590_v15 }
 0x947   :  { %v1599_v62 = vpop.permute.xlu0 %1598 }
 0x948   :  { %v1593_v59 = vmul.f32 %v1592_v48, %v2368_v31 }
 0x94a   :  { %1595 = vrot.lane.b32.xlu1 %v1593_v59, %s1891_s26 }
 0x94b   :  { %v1606_v36 = vpop.permute.xlu0 %1605 }
 0x94e   :  { %1601 = vrot.lane.b32.xlu1 %v1561_v13, %s1891_s26 }
 0x9bc   :  { %v1596_v26 = vpop.permute.xlu1 %1595 }
 0x9bd   :  { %v1609_v2 = vsel %vm1608_vm14, %v1596_v26, %v1599_v62 }
 0x9c0   :  { %v1602_v8 = vpop.permute.xlu1 %1601 }
 0x9c1   :  { %v1611_v60 = vsel %vm1610_vm15, %v1609_v2, %v1602_v8 }
 0x9c2   :  { %v1613_v54 = vsel %vm1612_vm0, %v1611_v60, %v1606_v36 }
 0x9c3   :  { %1614 = vst.msk [vmem:[%s2623_s4] sm:$0xff] %vm261_vm1, %v1613_v54 }
 0x9c4   :  { %1619 = vsyncpa [#allocation3], 1 }
 0x9c5   :  { %1620 = vsyncpa [#allocation5], 1 }

</bundles_post_ra>
